<compile_context>
chip_gen: v7x
topology: tpu7x:2x2x1
jax: 0.10.0
libtpu: 0.0.40
codegen_flags: <defaults>
</compile_context>

<pallas_src>
import functools

import jax
import jax.numpy as jnp
from jax.experimental import pallas as pl
from jax.experimental.pallas import tpu as pltpu


def _gru_chunk_kernel(x_ref, wih_ref, whh_ref, bias_ref, bhn_ref, y_ref, h_ref,
                      *, residual: bool):
    """One (batch-block, time-chunk) tile of the GRU + residual + ReLU.

    x_ref   : (Tc, Bb, I)   time-major input chunk
    wih_ref : (I, GP)       W_ih^T, gate dim zero-padded to GP (full lanes)
    whh_ref : (H, GP)       W_hh^T, gate dim zero-padded to GP
    bias_ref: (1, GP)       b_ih + [b_hh_r, b_hh_z, 0], zero-padded
    bhn_ref : (1, H)        b_hh_n (n = tanh(gi_n + r * (gh_n + b_hh_n)))
    y_ref   : (Bb, Tc*W)    lane-dense output block, W = H+I (residual) or H
    h_ref   : (Bb, H)       VMEM scratch: hidden state carried across chunks
    """
    c = pl.program_id(1)                       # time-chunk index (sequential axis)

    @pl.when(c == 0)
    def _():
        h_ref[...] = jnp.zeros_like(h_ref)

    Tc, Bb, I = x_ref.shape
    H = whh_ref.shape[0]
    out_w = H + I if residual else H

    wih = wih_ref[...]                         # loaded once per chunk, stays resident
    whh = whh_ref[...]
    bias = bias_ref[...]
    bhn = bhn_ref[...]

    h = h_ref[...]
    # Static unroll over the time chunk: t is a Python int, so every output
    # store below uses a static lane offset into the lane-dense output block.
    for t in range(Tc):
        x_t = x_ref[t]                                                  # (Bb, I)
        # gi is independent of h -> off the serial h_{t-1}->h_t chain; the fully
        # unrolled chunk lets the scheduler overlap it with the recurrence.
        gi = jnp.dot(x_t, wih, preferred_element_type=jnp.float32) + bias  # (Bb, GP)
        gh = jnp.dot(h, whh, preferred_element_type=jnp.float32)           # (Bb, GP)
        rz = jax.nn.sigmoid(gi[:, :2 * H] + gh[:, :2 * H])      # fused r/z sigmoid
        z = rz[:, H:2 * H]
        n = jnp.tanh(gi[:, 2 * H:3 * H] + rz[:, :H] * (gh[:, 2 * H:3 * H] + bhn))
        h = n + z * (h - n)                                     # == (1-z)*n + z*h
        base = t * out_w
        y_ref[:, base:base + H] = jnp.maximum(h, 0.0)           # relu(h_t)
        if residual:
            y_ref[:, base + H:base + out_w] = jnp.maximum(x_t, 0.0)  # relu(x_t)
    h_ref[...] = h


def _pick_b_block(B):
    """MXU-row-filling batch block; prefer >=2 blocks (v7x second TensorCore)."""
    for cand in (256, 128, 64, 32, 16, 8):
        if B % cand == 0 and B // cand >= 2:
            return cand
    for cand in (256, 128, 64, 32, 16, 8):
        if B % cand == 0:
            return cand
    return B


def rnn_block_v2(x, wih, whh, bih, bhh, *, residual=True,
                 t_chunk=None, b_block=None):
    """x: (B, T, I) float32 (batch_first, matching the PyTorch module).

    wih: (3H, I), whh: (3H, H), bih/bhh: (3H,)  -- PyTorch GRU parameter shapes.
    Returns (B, T, H+I) if residual else (B, T, H).
    """
    B, T, I = x.shape
    H = wih.shape[0] // 3
    GP = ((3 * H + 127) // 128) * 128          # gate dim padded to full lanes
    out_w = H + I if residual else H
    f32 = jnp.float32

    x = x.astype(f32)
    wih = wih.astype(f32)
    whh = whh.astype(f32)
    bih = bih.astype(f32)
    bhh = bhh.astype(f32)

    # Fold b_ih (all gates) and b_hh's r/z slices into the input-projection bias;
    # only the n-gate hidden bias must stay inside the recurrence.
    bias_comb = bih + jnp.concatenate([bhh[:2 * H], jnp.zeros((H,), f32)])
    wih_p = jnp.zeros((I, GP), f32).at[:, :3 * H].set(wih.T)
    whh_p = jnp.zeros((H, GP), f32).at[:, :3 * H].set(whh.T)
    bias_p = jnp.zeros((1, GP), f32).at[0, :3 * H].set(bias_comb)
    bhn = bhh[2 * H:].reshape(1, H)

    # Time-major x so the in-kernel per-step read x_ref[t] is a clean
    # leading-dim slice (this is the only wrapper-side data movement left).
    x_tm = jnp.transpose(x, (1, 0, 2))         # (T, B, I)

    # ---- generation-aware sizing --------------------------------------------
    try:
        vmem_bytes = int(pltpu.get_tpu_info().vmem_capacity_bytes)
    except Exception:
        vmem_bytes = 64 * 1024 * 1024          # conservative (v7x per-core VMEM)
    vmem_limit = max(32 * 1024 * 1024, min(vmem_bytes * 3 // 4, 96 * 1024 * 1024))
    block_budget = vmem_limit // 2             # headroom for double-buffered blocks

    if b_block is None:
        b_block = _pick_b_block(B)
    assert B % b_block == 0, "b_block must divide B"
    assert b_block == B or b_block % 8 == 0, \
        "partial batch blocks must be 8-aligned (sublane granularity)"

    if t_chunk is None:
        cap = 16 if b_block >= 128 else 32     # bound vreg pressure at large Bb
        per_step = b_block * 4 * (2 * I + 2 * out_w)   # x + y blocks, double-buffered
        t_chunk = int(max(1, min(T, cap, block_budget // max(per_step, 1))))
        while T % t_chunk:
            t_chunk -= 1
    assert T % t_chunk == 0, "t_chunk must divide T"
    # Lane-dense output blocks must be 128-aligned unless one block spans all of T.
    if T // t_chunk > 1 and (t_chunk * out_w) % 128 != 0:
        fixed = None
        for tc in range(t_chunk, 0, -1):
            if T % tc == 0 and (tc * out_w) % 128 == 0:
                fixed = tc
                break
        t_chunk = fixed if fixed is not None else T

    num_b = B // b_block
    num_c = T // t_chunk

    kernel = functools.partial(_gru_chunk_kernel, residual=residual)

    y2d = pl.pallas_call(
        kernel,
        out_shape=jax.ShapeDtypeStruct((B, T * out_w), f32),
        grid_spec=pltpu.PrefetchScalarGridSpec(
            num_scalar_prefetch=0,
            grid=(num_b, num_c),
            in_specs=[
                pl.BlockSpec((t_chunk, b_block, I), lambda b, c: (c, b, 0)),
                pl.BlockSpec((I, GP), lambda b, c: (0, 0)),
                pl.BlockSpec((H, GP), lambda b, c: (0, 0)),
                pl.BlockSpec((1, GP), lambda b, c: (0, 0)),
                pl.BlockSpec((1, H), lambda b, c: (0, 0)),
            ],
            out_specs=pl.BlockSpec((b_block, t_chunk * out_w), lambda b, c: (b, c)),
            scratch_shapes=[pltpu.VMEM((b_block, H), f32)],   # carried hidden state
        ),
        compiler_params=pltpu.CompilerParams(
            # batch blocks are independent (v7x second TensorCore); the time
            # axis is a true recurrence -> sequential, innermost.
            dimension_semantics=("parallel", "arbitrary"),
            vmem_limit_bytes=int(vmem_limit),
        ),
    )(x_tm, wih_p, whh_p, bias_p, bhn)

    # Free reshape; no transpose / concat HBM round trips in the wrapper.
    return y2d.reshape(B, T, out_w)


def _gru_reference(x, wih, whh, bih, bhh, residual=True):
    """Pure-JAX reference matching torch.nn.GRU (single layer, batch_first)."""
    B, T, I = x.shape
    H = wih.shape[0] // 3

    def step(h, x_t):
        gi = x_t @ wih.T + bih
        gh = h @ whh.T + bhh
        r = jax.nn.sigmoid(gi[:, :H] + gh[:, :H])
        z = jax.nn.sigmoid(gi[:, H:2 * H] + gh[:, H:2 * H])
        n = jnp.tanh(gi[:, 2 * H:] + r * gh[:, 2 * H:])
        h_new = (1.0 - z) * n + z * h
        return h_new, h_new

    h0 = jnp.zeros((B, H), jnp.float32)
    _, hs = jax.lax.scan(step, h0, jnp.transpose(x, (1, 0, 2)))
    y = jnp.transpose(hs, (1, 0, 2))                            # (B, T, H)
    if residual:
        y = jnp.concatenate([y, x], axis=-1)
    return jnp.maximum(y, 0.0)


if __name__ == "__main__":
    B, T, I, H = 2, 8, 32, 32
    key = jax.random.PRNGKey(0)
    k_x, k_wih, k_whh, k_bih, k_bhh = jax.random.split(key, 5)

    # Deterministic parameter init (PyTorch default: U(-1/sqrt(H), 1/sqrt(H))).
    s = 1.0 / jnp.sqrt(jnp.float32(H))
    x = jax.random.normal(k_x, (B, T, I), dtype=jnp.float32)
    wih = jax.random.uniform(k_wih, (3 * H, I), minval=-s, maxval=s, dtype=jnp.float32)
    whh = jax.random.uniform(k_whh, (3 * H, H), minval=-s, maxval=s, dtype=jnp.float32)
    bih = jax.random.uniform(k_bih, (3 * H,), minval=-s, maxval=s, dtype=jnp.float32)
    bhh = jax.random.uniform(k_bhh, (3 * H,), minval=-s, maxval=s, dtype=jnp.float32)

    y = rnn_block_v2(x, wih, whh, bih, bhh, residual=True)
    y = jax.block_until_ready(y)

    y_ref = _gru_reference(x, wih, whh, bih, bhh, residual=True)
    assert y.shape == (B, T, H + I), y.shape
    assert jnp.allclose(y, y_ref, atol=1e-5, rtol=1e-5), float(jnp.max(jnp.abs(y - y_ref)))

    print("KERNEL_OK")
</pallas_src>

<mosaic_0001>
module attributes {stable_mosaic.version = 11 : i64} {
  func.func @_gru_chunk_kernel(%arg0: i32, %arg1: i32, %arg2: memref<8x2x32xf32, #tpu.memory_space<vmem>>, %arg3: memref<32x128xf32, #tpu.memory_space<vmem>>, %arg4: memref<32x128xf32, #tpu.memory_space<vmem>>, %arg5: memref<1x128xf32, #tpu.memory_space<vmem>>, %arg6: memref<1x32xf32, #tpu.memory_space<vmem>>, %arg7: memref<2x512xf32, #tpu.memory_space<vmem>>, %arg8: memref<2x32xf32, #tpu.memory_space<vmem>>) attributes {dimension_semantics = [#tpu.dimension_semantics<parallel>, #tpu.dimension_semantics<arbitrary>], iteration_bounds = array<i64: 1, 1>, scalar_prefetch = 0 : i64, scratch_operands = 1 : i64, tpu.core_type = #tpu.core_type<tc>, window_params = [{transform_indices = @transform_0, window_bounds = array<i64: 8, 2, 32>}, {pipeline_mode = #tpu.pipeline_mode<synchronous>, transform_indices = @transform_1, window_bounds = array<i64: 32, 128>}, {pipeline_mode = #tpu.pipeline_mode<synchronous>, transform_indices = @transform_2, window_bounds = array<i64: 32, 128>}, {pipeline_mode = #tpu.pipeline_mode<synchronous>, transform_indices = @transform_3, window_bounds = array<i64: 1, 128>}, {pipeline_mode = #tpu.pipeline_mode<synchronous>, transform_indices = @transform_4, window_bounds = array<i64: 1, 32>}, {transform_indices = @transform_5, window_bounds = array<i64: 2, 512>}]} {
    %c0_i32 = arith.constant 0 : i32
    %0 = arith.cmpi eq, %arg1, %c0_i32 : i32
    %1 = arith.extui %0 : i1 to i32
    %c0_i32_0 = arith.constant 0 : i32
    %2 = arith.cmpi ne, %1, %c0_i32_0 : i32
    scf.if %2 {
      %cst_85 = arith.constant 0.000000e+00 : f32
      %265 = vector.broadcast %cst_85 : f32 to vector<2x32xf32>
      %c0_86 = arith.constant 0 : index
      %c0_87 = arith.constant 0 : index
      %266 = vector.load %arg8[%c0_86, %c0_87] : memref<2x32xf32, #tpu.memory_space<vmem>>, vector<2x32xf32>
      tpu.vector_store %arg8[%c0_86, %c0_87], %265 {strides = array<i32>} : memref<2x32xf32, #tpu.memory_space<vmem>>, vector<2x32xf32>,
    } else {
    }
    %c0 = arith.constant 0 : index
    %c0_1 = arith.constant 0 : index
    %3 = vector.load %arg3[%c0, %c0_1] : memref<32x128xf32, #tpu.memory_space<vmem>>, vector<32x128xf32>
    %c0_2 = arith.constant 0 : index
    %c0_3 = arith.constant 0 : index
    %4 = vector.load %arg4[%c0_2, %c0_3] : memref<32x128xf32, #tpu.memory_space<vmem>>, vector<32x128xf32>
    %c0_4 = arith.constant 0 : index
    %c0_5 = arith.constant 0 : index
    %5 = vector.load %arg5[%c0_4, %c0_5] : memref<1x128xf32, #tpu.memory_space<vmem>>, vector<1x128xf32>
    %c0_6 = arith.constant 0 : index
    %c0_7 = arith.constant 0 : index
    %6 = vector.load %arg6[%c0_6, %c0_7] : memref<1x32xf32, #tpu.memory_space<vmem>>, vector<1x32xf32>
    %c0_8 = arith.constant 0 : index
    %c0_9 = arith.constant 0 : index
    %7 = vector.load %arg8[%c0_8, %c0_9] : memref<2x32xf32, #tpu.memory_space<vmem>>, vector<2x32xf32>
    %c0_10 = arith.constant 0 : index
    %c0_11 = arith.constant 0 : index
    %c0_12 = arith.constant 0 : index
    %8 = vector.load %arg2[%c0_10, %c0_11, %c0_12] : memref<8x2x32xf32, #tpu.memory_space<vmem>>, vector<1x2x32xf32>
    %9 = vector.shape_cast %8 : vector<1x2x32xf32> to vector<2x32xf32>
    %cst = arith.constant dense<0.000000e+00> : vector<2x128xf32>
    %10 = tpu.matmul %9, %3, %cst {dimension_numbers = #tpu.dot_dimension_numbers<[1], [0], [0], [1], [0, 0, 1, 1], [], []>} : vector<2x32xf32>, vector<32x128xf32>, vector<2x128xf32> -> vector<2x128xf32>
    %11 = vector.broadcast %5 : vector<1x128xf32> to vector<2x128xf32>
    %12 = arith.addf %10, %11 : vector<2x128xf32>
    %cst_13 = arith.constant dense<0.000000e+00> : vector<2x128xf32>
    %13 = tpu.matmul %7, %4, %cst_13 {dimension_numbers = #tpu.dot_dimension_numbers<[1], [0], [0], [1], [0, 0, 1, 1], [], []>} : vector<2x32xf32>, vector<32x128xf32>, vector<2x128xf32> -> vector<2x128xf32>
    %14 = vector.extract_strided_slice %12 {offsets = [0, 0], sizes = [2, 64], strides = [1, 1]} : vector<2x128xf32> to vector<2x64xf32>
    %15 = vector.extract_strided_slice %13 {offsets = [0, 0], sizes = [2, 64], strides = [1, 1]} : vector<2x128xf32> to vector<2x64xf32>
    %16 = arith.addf %14, %15 : vector<2x64xf32>
    %17 = arith.negf %16 : vector<2x64xf32>
    %18 = math.exp %17 : vector<2x64xf32>
    %cst_14 = arith.constant 1.000000e+00 : f32
    %19 = vector.broadcast %cst_14 : f32 to vector<2x64xf32>
    %20 = arith.addf %19, %18 : vector<2x64xf32>
    %21 = arith.divf %19, %20 : vector<2x64xf32>
    %22 = vector.extract_strided_slice %21 {offsets = [0, 32], sizes = [2, 32], strides = [1, 1]} : vector<2x64xf32> to vector<2x32xf32>
    %23 = vector.extract_strided_slice %12 {offsets = [0, 64], sizes = [2, 32], strides = [1, 1]} : vector<2x128xf32> to vector<2x32xf32>
    %24 = vector.extract_strided_slice %21 {offsets = [0, 0], sizes = [2, 32], strides = [1, 1]} : vector<2x64xf32> to vector<2x32xf32>
    %25 = vector.extract_strided_slice %13 {offsets = [0, 64], sizes = [2, 32], strides = [1, 1]} : vector<2x128xf32> to vector<2x32xf32>
    %26 = vector.broadcast %6 : vector<1x32xf32> to vector<2x32xf32>
    %27 = arith.addf %25, %26 : vector<2x32xf32>
    %28 = arith.mulf %24, %27 : vector<2x32xf32>
    %29 = arith.addf %23, %28 : vector<2x32xf32>
    %30 = math.tanh %29 : vector<2x32xf32>
    %31 = arith.subf %7, %30 : vector<2x32xf32>
    %32 = arith.mulf %22, %31 : vector<2x32xf32>
    %33 = arith.addf %30, %32 : vector<2x32xf32>
    %cst_15 = arith.constant 0.000000e+00 : f32
    %34 = vector.broadcast %cst_15 : f32 to vector<2x32xf32>
    %35 = arith.maximumf %33, %34 : vector<2x32xf32>
    %c0_16 = arith.constant 0 : index
    %c0_17 = arith.constant 0 : index
    %36 = vector.load %arg7[%c0_16, %c0_17] : memref<2x512xf32, #tpu.memory_space<vmem>>, vector<2x32xf32>
    tpu.vector_store %arg7[%c0_16, %c0_17], %35 {strides = array<i32>} : memref<2x512xf32, #tpu.memory_space<vmem>>, vector<2x32xf32>,
    %cst_18 = arith.constant 0.000000e+00 : f32
    %37 = vector.broadcast %cst_18 : f32 to vector<2x32xf32>
    %38 = arith.maximumf %9, %37 : vector<2x32xf32>
    %c0_19 = arith.constant 0 : index
    %c32 = arith.constant 32 : index
    %39 = vector.load %arg7[%c0_19, %c32] : memref<2x512xf32, #tpu.memory_space<vmem>>, vector<2x32xf32>
    tpu.vector_store %arg7[%c0_19, %c32], %38 {strides = array<i32>} : memref<2x512xf32, #tpu.memory_space<vmem>>, vector<2x32xf32>,
    %c1 = arith.constant 1 : index
    %c0_20 = arith.constant 0 : index
    %c0_21 = arith.constant 0 : index
    %40 = vector.load %arg2[%c1, %c0_20, %c0_21] : memref<8x2x32xf32, #tpu.memory_space<vmem>>, vector<1x2x32xf32>
    %41 = vector.shape_cast %40 : vector<1x2x32xf32> to vector<2x32xf32>
    %cst_22 = arith.constant dense<0.000000e+00> : vector<2x128xf32>
    %42 = tpu.matmul %41, %3, %cst_22 {dimension_numbers = #tpu.dot_dimension_numbers<[1], [0], [0], [1], [0, 0, 1, 1], [], []>} : vector<2x32xf32>, vector<32x128xf32>, vector<2x128xf32> -> vector<2x128xf32>
    %43 = vector.broadcast %5 : vector<1x128xf32> to vector<2x128xf32>
    %44 = arith.addf %42, %43 : vector<2x128xf32>
    %cst_23 = arith.constant dense<0.000000e+00> : vector<2x128xf32>
    %45 = tpu.matmul %33, %4, %cst_23 {dimension_numbers = #tpu.dot_dimension_numbers<[1], [0], [0], [1], [0, 0, 1, 1], [], []>} : vector<2x32xf32>, vector<32x128xf32>, vector<2x128xf32> -> vector<2x128xf32>
    %46 = vector.extract_strided_slice %44 {offsets = [0, 0], sizes = [2, 64], strides = [1, 1]} : vector<2x128xf32> to vector<2x64xf32>
    %47 = vector.extract_strided_slice %45 {offsets = [0, 0], sizes = [2, 64], strides = [1, 1]} : vector<2x128xf32> to vector<2x64xf32>
    %48 = arith.addf %46, %47 : vector<2x64xf32>
    %49 = arith.negf %48 : vector<2x64xf32>
    %50 = math.exp %49 : vector<2x64xf32>
    %cst_24 = arith.constant 1.000000e+00 : f32
    %51 = vector.broadcast %cst_24 : f32 to vector<2x64xf32>
    %52 = arith.addf %51, %50 : vector<2x64xf32>
    %53 = arith.divf %51, %52 : vector<2x64xf32>
    %54 = vector.extract_strided_slice %53 {offsets = [0, 32], sizes = [2, 32], strides = [1, 1]} : vector<2x64xf32> to vector<2x32xf32>
    %55 = vector.extract_strided_slice %44 {offsets = [0, 64], sizes = [2, 32], strides = [1, 1]} : vector<2x128xf32> to vector<2x32xf32>
    %56 = vector.extract_strided_slice %53 {offsets = [0, 0], sizes = [2, 32], strides = [1, 1]} : vector<2x64xf32> to vector<2x32xf32>
    %57 = vector.extract_strided_slice %45 {offsets = [0, 64], sizes = [2, 32], strides = [1, 1]} : vector<2x128xf32> to vector<2x32xf32>
    %58 = vector.broadcast %6 : vector<1x32xf32> to vector<2x32xf32>
    %59 = arith.addf %57, %58 : vector<2x32xf32>
    %60 = arith.mulf %56, %59 : vector<2x32xf32>
    %61 = arith.addf %55, %60 : vector<2x32xf32>
    %62 = math.tanh %61 : vector<2x32xf32>
    %63 = arith.subf %33, %62 : vector<2x32xf32>
    %64 = arith.mulf %54, %63 : vector<2x32xf32>
    %65 = arith.addf %62, %64 : vector<2x32xf32>
    %cst_25 = arith.constant 0.000000e+00 : f32
    %66 = vector.broadcast %cst_25 : f32 to vector<2x32xf32>
    %67 = arith.maximumf %65, %66 : vector<2x32xf32>
    %c0_26 = arith.constant 0 : index
    %c64 = arith.constant 64 : index
    %68 = vector.load %arg7[%c0_26, %c64] : memref<2x512xf32, #tpu.memory_space<vmem>>, vector<2x32xf32>
    tpu.vector_store %arg7[%c0_26, %c64], %67 {strides = array<i32>} : memref<2x512xf32, #tpu.memory_space<vmem>>, vector<2x32xf32>,
    %cst_27 = arith.constant 0.000000e+00 : f32
    %69 = vector.broadcast %cst_27 : f32 to vector<2x32xf32>
    %70 = arith.maximumf %41, %69 : vector<2x32xf32>
    %c0_28 = arith.constant 0 : index
    %c96 = arith.constant 96 : index
    %71 = vector.load %arg7[%c0_28, %c96] : memref<2x512xf32, #tpu.memory_space<vmem>>, vector<2x32xf32>
    tpu.vector_store %arg7[%c0_28, %c96], %70 {strides = array<i32>} : memref<2x512xf32, #tpu.memory_space<vmem>>, vector<2x32xf32>,
    %c2 = arith.constant 2 : index
    %c0_29 = arith.constant 0 : index
    %c0_30 = arith.constant 0 : index
    %72 = vector.load %arg2[%c2, %c0_29, %c0_30] : memref<8x2x32xf32, #tpu.memory_space<vmem>>, vector<1x2x32xf32>
    %73 = vector.shape_cast %72 : vector<1x2x32xf32> to vector<2x32xf32>
    %cst_31 = arith.constant dense<0.000000e+00> : vector<2x128xf32>
    %74 = tpu.matmul %73, %3, %cst_31 {dimension_numbers = #tpu.dot_dimension_numbers<[1], [0], [0], [1], [0, 0, 1, 1], [], []>} : vector<2x32xf32>, vector<32x128xf32>, vector<2x128xf32> -> vector<2x128xf32>
    %75 = vector.broadcast %5 : vector<1x128xf32> to vector<2x128xf32>
    %76 = arith.addf %74, %75 : vector<2x128xf32>
    %cst_32 = arith.constant dense<0.000000e+00> : vector<2x128xf32>
    %77 = tpu.matmul %65, %4, %cst_32 {dimension_numbers = #tpu.dot_dimension_numbers<[1], [0], [0], [1], [0, 0, 1, 1], [], []>} : vector<2x32xf32>, vector<32x128xf32>, vector<2x128xf32> -> vector<2x128xf32>
    %78 = vector.extract_strided_slice %76 {offsets = [0, 0], sizes = [2, 64], strides = [1, 1]} : vector<2x128xf32> to vector<2x64xf32>
    %79 = vector.extract_strided_slice %77 {offsets = [0, 0], sizes = [2, 64], strides = [1, 1]} : vector<2x128xf32> to vector<2x64xf32>
    %80 = arith.addf %78, %79 : vector<2x64xf32>
    %81 = arith.negf %80 : vector<2x64xf32>
    %82 = math.exp %81 : vector<2x64xf32>
    %cst_33 = arith.constant 1.000000e+00 : f32
    %83 = vector.broadcast %cst_33 : f32 to vector<2x64xf32>
    %84 = arith.addf %83, %82 : vector<2x64xf32>
    %85 = arith.divf %83, %84 : vector<2x64xf32>
    %86 = vector.extract_strided_slice %85 {offsets = [0, 32], sizes = [2, 32], strides = [1, 1]} : vector<2x64xf32> to vector<2x32xf32>
    %87 = vector.extract_strided_slice %76 {offsets = [0, 64], sizes = [2, 32], strides = [1, 1]} : vector<2x128xf32> to vector<2x32xf32>
    %88 = vector.extract_strided_slice %85 {offsets = [0, 0], sizes = [2, 32], strides = [1, 1]} : vector<2x64xf32> to vector<2x32xf32>
    %89 = vector.extract_strided_slice %77 {offsets = [0, 64], sizes = [2, 32], strides = [1, 1]} : vector<2x128xf32> to vector<2x32xf32>
    %90 = vector.broadcast %6 : vector<1x32xf32> to vector<2x32xf32>
    %91 = arith.addf %89, %90 : vector<2x32xf32>
    %92 = arith.mulf %88, %91 : vector<2x32xf32>
    %93 = arith.addf %87, %92 : vector<2x32xf32>
    %94 = math.tanh %93 : vector<2x32xf32>
    %95 = arith.subf %65, %94 : vector<2x32xf32>
    %96 = arith.mulf %86, %95 : vector<2x32xf32>
    %97 = arith.addf %94, %96 : vector<2x32xf32>
    %cst_34 = arith.constant 0.000000e+00 : f32
    %98 = vector.broadcast %cst_34 : f32 to vector<2x32xf32>
    %99 = arith.maximumf %97, %98 : vector<2x32xf32>
    %c0_35 = arith.constant 0 : index
    %c128 = arith.constant 128 : index
    %100 = vector.load %arg7[%c0_35, %c128] : memref<2x512xf32, #tpu.memory_space<vmem>>, vector<2x32xf32>
    tpu.vector_store %arg7[%c0_35, %c128], %99 {strides = array<i32>} : memref<2x512xf32, #tpu.memory_space<vmem>>, vector<2x32xf32>,
    %cst_36 = arith.constant 0.000000e+00 : f32
    %101 = vector.broadcast %cst_36 : f32 to vector<2x32xf32>
    %102 = arith.maximumf %73, %101 : vector<2x32xf32>
    %c0_37 = arith.constant 0 : index
    %c160 = arith.constant 160 : index
    %103 = vector.load %arg7[%c0_37, %c160] : memref<2x512xf32, #tpu.memory_space<vmem>>, vector<2x32xf32>
    tpu.vector_store %arg7[%c0_37, %c160], %102 {strides = array<i32>} : memref<2x512xf32, #tpu.memory_space<vmem>>, vector<2x32xf32>,
    %c3 = arith.constant 3 : index
    %c0_38 = arith.constant 0 : index
    %c0_39 = arith.constant 0 : index
    %104 = vector.load %arg2[%c3, %c0_38, %c0_39] : memref<8x2x32xf32, #tpu.memory_space<vmem>>, vector<1x2x32xf32>
    %105 = vector.shape_cast %104 : vector<1x2x32xf32> to vector<2x32xf32>
    %cst_40 = arith.constant dense<0.000000e+00> : vector<2x128xf32>
    %106 = tpu.matmul %105, %3, %cst_40 {dimension_numbers = #tpu.dot_dimension_numbers<[1], [0], [0], [1], [0, 0, 1, 1], [], []>} : vector<2x32xf32>, vector<32x128xf32>, vector<2x128xf32> -> vector<2x128xf32>
    %107 = vector.broadcast %5 : vector<1x128xf32> to vector<2x128xf32>
    %108 = arith.addf %106, %107 : vector<2x128xf32>
    %cst_41 = arith.constant dense<0.000000e+00> : vector<2x128xf32>
    %109 = tpu.matmul %97, %4, %cst_41 {dimension_numbers = #tpu.dot_dimension_numbers<[1], [0], [0], [1], [0, 0, 1, 1], [], []>} : vector<2x32xf32>, vector<32x128xf32>, vector<2x128xf32> -> vector<2x128xf32>
    %110 = vector.extract_strided_slice %108 {offsets = [0, 0], sizes = [2, 64], strides = [1, 1]} : vector<2x128xf32> to vector<2x64xf32>
    %111 = vector.extract_strided_slice %109 {offsets = [0, 0], sizes = [2, 64], strides = [1, 1]} : vector<2x128xf32> to vector<2x64xf32>
    %112 = arith.addf %110, %111 : vector<2x64xf32>
    %113 = arith.negf %112 : vector<2x64xf32>
    %114 = math.exp %113 : vector<2x64xf32>
    %cst_42 = arith.constant 1.000000e+00 : f32
    %115 = vector.broadcast %cst_42 : f32 to vector<2x64xf32>
    %116 = arith.addf %115, %114 : vector<2x64xf32>
    %117 = arith.divf %115, %116 : vector<2x64xf32>
    %118 = vector.extract_strided_slice %117 {offsets = [0, 32], sizes = [2, 32], strides = [1, 1]} : vector<2x64xf32> to vector<2x32xf32>
    %119 = vector.extract_strided_slice %108 {offsets = [0, 64], sizes = [2, 32], strides = [1, 1]} : vector<2x128xf32> to vector<2x32xf32>
    %120 = vector.extract_strided_slice %117 {offsets = [0, 0], sizes = [2, 32], strides = [1, 1]} : vector<2x64xf32> to vector<2x32xf32>
    %121 = vector.extract_strided_slice %109 {offsets = [0, 64], sizes = [2, 32], strides = [1, 1]} : vector<2x128xf32> to vector<2x32xf32>
    %122 = vector.broadcast %6 : vector<1x32xf32> to vector<2x32xf32>
    %123 = arith.addf %121, %122 : vector<2x32xf32>
    %124 = arith.mulf %120, %123 : vector<2x32xf32>
    %125 = arith.addf %119, %124 : vector<2x32xf32>
    %126 = math.tanh %125 : vector<2x32xf32>
    %127 = arith.subf %97, %126 : vector<2x32xf32>
    %128 = arith.mulf %118, %127 : vector<2x32xf32>
    %129 = arith.addf %126, %128 : vector<2x32xf32>
    %cst_43 = arith.constant 0.000000e+00 : f32
    %130 = vector.broadcast %cst_43 : f32 to vector<2x32xf32>
    %131 = arith.maximumf %129, %130 : vector<2x32xf32>
    %c0_44 = arith.constant 0 : index
    %c192 = arith.constant 192 : index
    %132 = vector.load %arg7[%c0_44, %c192] : memref<2x512xf32, #tpu.memory_space<vmem>>, vector<2x32xf32>
    tpu.vector_store %arg7[%c0_44, %c192], %131 {strides = array<i32>} : memref<2x512xf32, #tpu.memory_space<vmem>>, vector<2x32xf32>,
    %cst_45 = arith.constant 0.000000e+00 : f32
    %133 = vector.broadcast %cst_45 : f32 to vector<2x32xf32>
    %134 = arith.maximumf %105, %133 : vector<2x32xf32>
    %c0_46 = arith.constant 0 : index
    %c224 = arith.constant 224 : index
    %135 = vector.load %arg7[%c0_46, %c224] : memref<2x512xf32, #tpu.memory_space<vmem>>, vector<2x32xf32>
    tpu.vector_store %arg7[%c0_46, %c224], %134 {strides = array<i32>} : memref<2x512xf32, #tpu.memory_space<vmem>>, vector<2x32xf32>,
    %c4 = arith.constant 4 : index
    %c0_47 = arith.constant 0 : index
    %c0_48 = arith.constant 0 : index
    %136 = vector.load %arg2[%c4, %c0_47, %c0_48] : memref<8x2x32xf32, #tpu.memory_space<vmem>>, vector<1x2x32xf32>
    %137 = vector.shape_cast %136 : vector<1x2x32xf32> to vector<2x32xf32>
    %cst_49 = arith.constant dense<0.000000e+00> : vector<2x128xf32>
    %138 = tpu.matmul %137, %3, %cst_49 {dimension_numbers = #tpu.dot_dimension_numbers<[1], [0], [0], [1], [0, 0, 1, 1], [], []>} : vector<2x32xf32>, vector<32x128xf32>, vector<2x128xf32> -> vector<2x128xf32>
    %139 = vector.broadcast %5 : vector<1x128xf32> to vector<2x128xf32>
    %140 = arith.addf %138, %139 : vector<2x128xf32>
    %cst_50 = arith.constant dense<0.000000e+00> : vector<2x128xf32>
    %141 = tpu.matmul %129, %4, %cst_50 {dimension_numbers = #tpu.dot_dimension_numbers<[1], [0], [0], [1], [0, 0, 1, 1], [], []>} : vector<2x32xf32>, vector<32x128xf32>, vector<2x128xf32> -> vector<2x128xf32>
    %142 = vector.extract_strided_slice %140 {offsets = [0, 0], sizes = [2, 64], strides = [1, 1]} : vector<2x128xf32> to vector<2x64xf32>
    %143 = vector.extract_strided_slice %141 {offsets = [0, 0], sizes = [2, 64], strides = [1, 1]} : vector<2x128xf32> to vector<2x64xf32>
    %144 = arith.addf %142, %143 : vector<2x64xf32>
    %145 = arith.negf %144 : vector<2x64xf32>
    %146 = math.exp %145 : vector<2x64xf32>
    %cst_51 = arith.constant 1.000000e+00 : f32
    %147 = vector.broadcast %cst_51 : f32 to vector<2x64xf32>
    %148 = arith.addf %147, %146 : vector<2x64xf32>
    %149 = arith.divf %147, %148 : vector<2x64xf32>
    %150 = vector.extract_strided_slice %149 {offsets = [0, 32], sizes = [2, 32], strides = [1, 1]} : vector<2x64xf32> to vector<2x32xf32>
    %151 = vector.extract_strided_slice %140 {offsets = [0, 64], sizes = [2, 32], strides = [1, 1]} : vector<2x128xf32> to vector<2x32xf32>
    %152 = vector.extract_strided_slice %149 {offsets = [0, 0], sizes = [2, 32], strides = [1, 1]} : vector<2x64xf32> to vector<2x32xf32>
    %153 = vector.extract_strided_slice %141 {offsets = [0, 64], sizes = [2, 32], strides = [1, 1]} : vector<2x128xf32> to vector<2x32xf32>
    %154 = vector.broadcast %6 : vector<1x32xf32> to vector<2x32xf32>
    %155 = arith.addf %153, %154 : vector<2x32xf32>
    %156 = arith.mulf %152, %155 : vector<2x32xf32>
    %157 = arith.addf %151, %156 : vector<2x32xf32>
    %158 = math.tanh %157 : vector<2x32xf32>
    %159 = arith.subf %129, %158 : vector<2x32xf32>
    %160 = arith.mulf %150, %159 : vector<2x32xf32>
    %161 = arith.addf %158, %160 : vector<2x32xf32>
    %cst_52 = arith.constant 0.000000e+00 : f32
    %162 = vector.broadcast %cst_52 : f32 to vector<2x32xf32>
    %163 = arith.maximumf %161, %162 : vector<2x32xf32>
    %c0_53 = arith.constant 0 : index
    %c256 = arith.constant 256 : index
    %164 = vector.load %arg7[%c0_53, %c256] : memref<2x512xf32, #tpu.memory_space<vmem>>, vector<2x32xf32>
    tpu.vector_store %arg7[%c0_53, %c256], %163 {strides = array<i32>} : memref<2x512xf32, #tpu.memory_space<vmem>>, vector<2x32xf32>,
    %cst_54 = arith.constant 0.000000e+00 : f32
    %165 = vector.broadcast %cst_54 : f32 to vector<2x32xf32>
    %166 = arith.maximumf %137, %165 : vector<2x32xf32>
    %c0_55 = arith.constant 0 : index
    %c288 = arith.constant 288 : index
    %167 = vector.load %arg7[%c0_55, %c288] : memref<2x512xf32, #tpu.memory_space<vmem>>, vector<2x32xf32>
    tpu.vector_store %arg7[%c0_55, %c288], %166 {strides = array<i32>} : memref<2x512xf32, #tpu.memory_space<vmem>>, vector<2x32xf32>,
    %c5 = arith.constant 5 : index
    %c0_56 = arith.constant 0 : index
    %c0_57 = arith.constant 0 : index
    %168 = vector.load %arg2[%c5, %c0_56, %c0_57] : memref<8x2x32xf32, #tpu.memory_space<vmem>>, vector<1x2x32xf32>
    %169 = vector.shape_cast %168 : vector<1x2x32xf32> to vector<2x32xf32>
    %cst_58 = arith.constant dense<0.000000e+00> : vector<2x128xf32>
    %170 = tpu.matmul %169, %3, %cst_58 {dimension_numbers = #tpu.dot_dimension_numbers<[1], [0], [0], [1], [0, 0, 1, 1], [], []>} : vector<2x32xf32>, vector<32x128xf32>, vector<2x128xf32> -> vector<2x128xf32>
    %171 = vector.broadcast %5 : vector<1x128xf32> to vector<2x128xf32>
    %172 = arith.addf %170, %171 : vector<2x128xf32>
    %cst_59 = arith.constant dense<0.000000e+00> : vector<2x128xf32>
    %173 = tpu.matmul %161, %4, %cst_59 {dimension_numbers = #tpu.dot_dimension_numbers<[1], [0], [0], [1], [0, 0, 1, 1], [], []>} : vector<2x32xf32>, vector<32x128xf32>, vector<2x128xf32> -> vector<2x128xf32>
    %174 = vector.extract_strided_slice %172 {offsets = [0, 0], sizes = [2, 64], strides = [1, 1]} : vector<2x128xf32> to vector<2x64xf32>
    %175 = vector.extract_strided_slice %173 {offsets = [0, 0], sizes = [2, 64], strides = [1, 1]} : vector<2x128xf32> to vector<2x64xf32>
    %176 = arith.addf %174, %175 : vector<2x64xf32>
    %177 = arith.negf %176 : vector<2x64xf32>
    %178 = math.exp %177 : vector<2x64xf32>
    %cst_60 = arith.constant 1.000000e+00 : f32
    %179 = vector.broadcast %cst_60 : f32 to vector<2x64xf32>
    %180 = arith.addf %179, %178 : vector<2x64xf32>
    %181 = arith.divf %179, %180 : vector<2x64xf32>
    %182 = vector.extract_strided_slice %181 {offsets = [0, 32], sizes = [2, 32], strides = [1, 1]} : vector<2x64xf32> to vector<2x32xf32>
    %183 = vector.extract_strided_slice %172 {offsets = [0, 64], sizes = [2, 32], strides = [1, 1]} : vector<2x128xf32> to vector<2x32xf32>
    %184 = vector.extract_strided_slice %181 {offsets = [0, 0], sizes = [2, 32], strides = [1, 1]} : vector<2x64xf32> to vector<2x32xf32>
    %185 = vector.extract_strided_slice %173 {offsets = [0, 64], sizes = [2, 32], strides = [1, 1]} : vector<2x128xf32> to vector<2x32xf32>
    %186 = vector.broadcast %6 : vector<1x32xf32> to vector<2x32xf32>
    %187 = arith.addf %185, %186 : vector<2x32xf32>
    %188 = arith.mulf %184, %187 : vector<2x32xf32>
    %189 = arith.addf %183, %188 : vector<2x32xf32>
    %190 = math.tanh %189 : vector<2x32xf32>
    %191 = arith.subf %161, %190 : vector<2x32xf32>
    %192 = arith.mulf %182, %191 : vector<2x32xf32>
    %193 = arith.addf %190, %192 : vector<2x32xf32>
    %cst_61 = arith.constant 0.000000e+00 : f32
    %194 = vector.broadcast %cst_61 : f32 to vector<2x32xf32>
    %195 = arith.maximumf %193, %194 : vector<2x32xf32>
    %c0_62 = arith.constant 0 : index
    %c320 = arith.constant 320 : index
    %196 = vector.load %arg7[%c0_62, %c320] : memref<2x512xf32, #tpu.memory_space<vmem>>, vector<2x32xf32>
    tpu.vector_store %arg7[%c0_62, %c320], %195 {strides = array<i32>} : memref<2x512xf32, #tpu.memory_space<vmem>>, vector<2x32xf32>,
    %cst_63 = arith.constant 0.000000e+00 : f32
    %197 = vector.broadcast %cst_63 : f32 to vector<2x32xf32>
    %198 = arith.maximumf %169, %197 : vector<2x32xf32>
    %c0_64 = arith.constant 0 : index
    %c352 = arith.constant 352 : index
    %199 = vector.load %arg7[%c0_64, %c352] : memref<2x512xf32, #tpu.memory_space<vmem>>, vector<2x32xf32>
    tpu.vector_store %arg7[%c0_64, %c352], %198 {strides = array<i32>} : memref<2x512xf32, #tpu.memory_space<vmem>>, vector<2x32xf32>,
    %c6 = arith.constant 6 : index
    %c0_65 = arith.constant 0 : index
    %c0_66 = arith.constant 0 : index
    %200 = vector.load %arg2[%c6, %c0_65, %c0_66] : memref<8x2x32xf32, #tpu.memory_space<vmem>>, vector<1x2x32xf32>
    %201 = vector.shape_cast %200 : vector<1x2x32xf32> to vector<2x32xf32>
    %cst_67 = arith.constant dense<0.000000e+00> : vector<2x128xf32>
    %202 = tpu.matmul %201, %3, %cst_67 {dimension_numbers = #tpu.dot_dimension_numbers<[1], [0], [0], [1], [0, 0, 1, 1], [], []>} : vector<2x32xf32>, vector<32x128xf32>, vector<2x128xf32> -> vector<2x128xf32>
    %203 = vector.broadcast %5 : vector<1x128xf32> to vector<2x128xf32>
    %204 = arith.addf %202, %203 : vector<2x128xf32>
    %cst_68 = arith.constant dense<0.000000e+00> : vector<2x128xf32>
    %205 = tpu.matmul %193, %4, %cst_68 {dimension_numbers = #tpu.dot_dimension_numbers<[1], [0], [0], [1], [0, 0, 1, 1], [], []>} : vector<2x32xf32>, vector<32x128xf32>, vector<2x128xf32> -> vector<2x128xf32>
    %206 = vector.extract_strided_slice %204 {offsets = [0, 0], sizes = [2, 64], strides = [1, 1]} : vector<2x128xf32> to vector<2x64xf32>
    %207 = vector.extract_strided_slice %205 {offsets = [0, 0], sizes = [2, 64], strides = [1, 1]} : vector<2x128xf32> to vector<2x64xf32>
    %208 = arith.addf %206, %207 : vector<2x64xf32>
    %209 = arith.negf %208 : vector<2x64xf32>
    %210 = math.exp %209 : vector<2x64xf32>
    %cst_69 = arith.constant 1.000000e+00 : f32
    %211 = vector.broadcast %cst_69 : f32 to vector<2x64xf32>
    %212 = arith.addf %211, %210 : vector<2x64xf32>
    %213 = arith.divf %211, %212 : vector<2x64xf32>
    %214 = vector.extract_strided_slice %213 {offsets = [0, 32], sizes = [2, 32], strides = [1, 1]} : vector<2x64xf32> to vector<2x32xf32>
    %215 = vector.extract_strided_slice %204 {offsets = [0, 64], sizes = [2, 32], strides = [1, 1]} : vector<2x128xf32> to vector<2x32xf32>
    %216 = vector.extract_strided_slice %213 {offsets = [0, 0], sizes = [2, 32], strides = [1, 1]} : vector<2x64xf32> to vector<2x32xf32>
    %217 = vector.extract_strided_slice %205 {offsets = [0, 64], sizes = [2, 32], strides = [1, 1]} : vector<2x128xf32> to vector<2x32xf32>
    %218 = vector.broadcast %6 : vector<1x32xf32> to vector<2x32xf32>
    %219 = arith.addf %217, %218 : vector<2x32xf32>
    %220 = arith.mulf %216, %219 : vector<2x32xf32>
    %221 = arith.addf %215, %220 : vector<2x32xf32>
    %222 = math.tanh %221 : vector<2x32xf32>
    %223 = arith.subf %193, %222 : vector<2x32xf32>
    %224 = arith.mulf %214, %223 : vector<2x32xf32>
    %225 = arith.addf %222, %224 : vector<2x32xf32>
    %cst_70 = arith.constant 0.000000e+00 : f32
    %226 = vector.broadcast %cst_70 : f32 to vector<2x32xf32>
    %227 = arith.maximumf %225, %226 : vector<2x32xf32>
    %c0_71 = arith.constant 0 : index
    %c384 = arith.constant 384 : index
    %228 = vector.load %arg7[%c0_71, %c384] : memref<2x512xf32, #tpu.memory_space<vmem>>, vector<2x32xf32>
    tpu.vector_store %arg7[%c0_71, %c384], %227 {strides = array<i32>} : memref<2x512xf32, #tpu.memory_space<vmem>>, vector<2x32xf32>,
    %cst_72 = arith.constant 0.000000e+00 : f32
    %229 = vector.broadcast %cst_72 : f32 to vector<2x32xf32>
    %230 = arith.maximumf %201, %229 : vector<2x32xf32>
    %c0_73 = arith.constant 0 : index
    %c416 = arith.constant 416 : index
    %231 = vector.load %arg7[%c0_73, %c416] : memref<2x512xf32, #tpu.memory_space<vmem>>, vector<2x32xf32>
    tpu.vector_store %arg7[%c0_73, %c416], %230 {strides = array<i32>} : memref<2x512xf32, #tpu.memory_space<vmem>>, vector<2x32xf32>,
    %c7 = arith.constant 7 : index
    %c0_74 = arith.constant 0 : index
    %c0_75 = arith.constant 0 : index
    %232 = vector.load %arg2[%c7, %c0_74, %c0_75] : memref<8x2x32xf32, #tpu.memory_space<vmem>>, vector<1x2x32xf32>
    %233 = vector.shape_cast %232 : vector<1x2x32xf32> to vector<2x32xf32>
    %cst_76 = arith.constant dense<0.000000e+00> : vector<2x128xf32>
    %234 = tpu.matmul %233, %3, %cst_76 {dimension_numbers = #tpu.dot_dimension_numbers<[1], [0], [0], [1], [0, 0, 1, 1], [], []>} : vector<2x32xf32>, vector<32x128xf32>, vector<2x128xf32> -> vector<2x128xf32>
    %235 = vector.broadcast %5 : vector<1x128xf32> to vector<2x128xf32>
    %236 = arith.addf %234, %235 : vector<2x128xf32>
    %cst_77 = arith.constant dense<0.000000e+00> : vector<2x128xf32>
    %237 = tpu.matmul %225, %4, %cst_77 {dimension_numbers = #tpu.dot_dimension_numbers<[1], [0], [0], [1], [0, 0, 1, 1], [], []>} : vector<2x32xf32>, vector<32x128xf32>, vector<2x128xf32> -> vector<2x128xf32>
    %238 = vector.extract_strided_slice %236 {offsets = [0, 0], sizes = [2, 64], strides = [1, 1]} : vector<2x128xf32> to vector<2x64xf32>
    %239 = vector.extract_strided_slice %237 {offsets = [0, 0], sizes = [2, 64], strides = [1, 1]} : vector<2x128xf32> to vector<2x64xf32>
    %240 = arith.addf %238, %239 : vector<2x64xf32>
    %241 = arith.negf %240 : vector<2x64xf32>
    %242 = math.exp %241 : vector<2x64xf32>
    %cst_78 = arith.constant 1.000000e+00 : f32
    %243 = vector.broadcast %cst_78 : f32 to vector<2x64xf32>
    %244 = arith.addf %243, %242 : vector<2x64xf32>
    %245 = arith.divf %243, %244 : vector<2x64xf32>
    %246 = vector.extract_strided_slice %245 {offsets = [0, 32], sizes = [2, 32], strides = [1, 1]} : vector<2x64xf32> to vector<2x32xf32>
    %247 = vector.extract_strided_slice %236 {offsets = [0, 64], sizes = [2, 32], strides = [1, 1]} : vector<2x128xf32> to vector<2x32xf32>
    %248 = vector.extract_strided_slice %245 {offsets = [0, 0], sizes = [2, 32], strides = [1, 1]} : vector<2x64xf32> to vector<2x32xf32>
    %249 = vector.extract_strided_slice %237 {offsets = [0, 64], sizes = [2, 32], strides = [1, 1]} : vector<2x128xf32> to vector<2x32xf32>
    %250 = vector.broadcast %6 : vector<1x32xf32> to vector<2x32xf32>
    %251 = arith.addf %249, %250 : vector<2x32xf32>
    %252 = arith.mulf %248, %251 : vector<2x32xf32>
    %253 = arith.addf %247, %252 : vector<2x32xf32>
    %254 = math.tanh %253 : vector<2x32xf32>
    %255 = arith.subf %225, %254 : vector<2x32xf32>
    %256 = arith.mulf %246, %255 : vector<2x32xf32>
    %257 = arith.addf %254, %256 : vector<2x32xf32>
    %cst_79 = arith.constant 0.000000e+00 : f32
    %258 = vector.broadcast %cst_79 : f32 to vector<2x32xf32>
    %259 = arith.maximumf %257, %258 : vector<2x32xf32>
    %c0_80 = arith.constant 0 : index
    %c448 = arith.constant 448 : index
    %260 = vector.load %arg7[%c0_80, %c448] : memref<2x512xf32, #tpu.memory_space<vmem>>, vector<2x32xf32>
    tpu.vector_store %arg7[%c0_80, %c448], %259 {strides = array<i32>} : memref<2x512xf32, #tpu.memory_space<vmem>>, vector<2x32xf32>,
    %cst_81 = arith.constant 0.000000e+00 : f32
    %261 = vector.broadcast %cst_81 : f32 to vector<2x32xf32>
    %262 = arith.maximumf %233, %261 : vector<2x32xf32>
    %c0_82 = arith.constant 0 : index
    %c480 = arith.constant 480 : index
    %263 = vector.load %arg7[%c0_82, %c480] : memref<2x512xf32, #tpu.memory_space<vmem>>, vector<2x32xf32>
    tpu.vector_store %arg7[%c0_82, %c480], %262 {strides = array<i32>} : memref<2x512xf32, #tpu.memory_space<vmem>>, vector<2x32xf32>,
    %c0_83 = arith.constant 0 : index
    %c0_84 = arith.constant 0 : index
    %264 = vector.load %arg8[%c0_83, %c0_84] : memref<2x32xf32, #tpu.memory_space<vmem>>, vector<2x32xf32>
    tpu.vector_store %arg8[%c0_83, %c0_84], %257 {strides = array<i32>} : memref<2x32xf32, #tpu.memory_space<vmem>>, vector<2x32xf32>,
    return
  }
  func.func @transform_0(%arg0: i32, %arg1: i32) -> (i32, i32, i32) {
    %c0_i32 = arith.constant 0 : i32
    %c0_i32_0 = arith.constant 0 : i32
    return %arg1, %arg0, %c0_i32 : i32, i32, i32
  }
  func.func @transform_1(%arg0: i32, %arg1: i32) -> (i32, i32) {
    %c0_i32 = arith.constant 0 : i32
    %c0_i32_0 = arith.constant 0 : i32
    %c0_i32_1 = arith.constant 0 : i32
    return %c0_i32, %c0_i32_0 : i32, i32
  }
  func.func @transform_2(%arg0: i32, %arg1: i32) -> (i32, i32) {
    %c0_i32 = arith.constant 0 : i32
    %c0_i32_0 = arith.constant 0 : i32
    %c0_i32_1 = arith.constant 0 : i32
    return %c0_i32, %c0_i32_0 : i32, i32
  }
  func.func @transform_3(%arg0: i32, %arg1: i32) -> (i32, i32) {
    %c0_i32 = arith.constant 0 : i32
    %c0_i32_0 = arith.constant 0 : i32
    %c0_i32_1 = arith.constant 0 : i32
    return %c0_i32, %c0_i32_0 : i32, i32
  }
  func.func @transform_4(%arg0: i32, %arg1: i32) -> (i32, i32) {
    %c0_i32 = arith.constant 0 : i32
    %c0_i32_0 = arith.constant 0 : i32
    %c0_i32_1 = arith.constant 0 : i32
    return %c0_i32, %c0_i32_0 : i32, i32
  }
  func.func @transform_5(%arg0: i32, %arg1: i32) -> (i32, i32) {
    %c0_i32 = arith.constant 0 : i32
    return %arg0, %arg1 : i32, i32
  }
}

</mosaic_0001>

<bundles_post_ra>
// kernel: tpu_custom_call.1
= control target key start
LH: loop header
LB: loop body
LE: loop exit
PB: predicated region body
PF: predicated region fallthrough
CT: control target
= control target key end

     0   :  { %10 = vsyncpa [#allocation4], 0  ;;  %s2648_s0 = inlined_call_operand.hbm [shape: f32[8,2,32], index: 0, kind: input, shape index: {}]   ;;  %s2649_s1 = inlined_call_operand.hbm [shape: f32[32,128], index: 1, kind: input, shape index: {}]   ;;  %s2650_s2 = inlined_call_operand.hbm [shape: f32[32,128], index: 2, kind: input, shape index: {}]   ;;  %s2651_s3 = inlined_call_operand.vmem [shape: f32[1,128], index: 3, kind: input, shape index: {}]   ;;  %s2652_s4 = inlined_call_operand.vmem [shape: f32[1,32], index: 4, kind: input, shape index: {}]   ;;  %s2653_s5 = inlined_call_operand.hbm [shape: f32[2,512], index: 5, kind: output, shape index: {}]  }
   0x1   :  { %11 = vsyncpa [#allocation7], 0 }
   0x2   :  { %12 = vsyncpa [#allocation5], 0  ;;  %s2258_s18 = smov [#allocation6]   ;;  %s2164_s22 = scalar_lea.hbm %s2649_s1, 512 }
   0x3   :  { %s30_s19 = sshll.u32 %s2258_s18, 4  ;;  %p2165_p0 = scmp.ne.s32.totalorder %s2649_s1, %s2164_s22  ;;  %s31_s19 = int_to_ptr.vmem [resolvable:$true] %s30_s19 }
   0x4   :  { %p2168_p1 = scmp.lt.u32.totalorder %s2164_s22, %s2649_s1 }
   0x6   :  { %p2170_p2 = pnand %p2168_p1, %p2165_p0 }
   0x8   :  { %2173 = shalt.err (!%p2170_p2)
}
   0x9   :  { %s2174_s27 = scalar_lea.vmem %s31_s19, 512  ;;  %p2179_p4 = scmp.lt.s32.totalorder %s31_s19, %s31_s19 }
   0xa   :  { %p2175_p3 = scmp.ne.s32.totalorder %s31_s19, %s2174_s27  ;;  %p2180_p5 = scmp.lt.s32.totalorder %s2174_s27, %s2174_s27 }
   0xc   :  { %p2181_p6 = por %p2180_p5, %p2179_p4 }
   0xe   :  { %p2182_p7 = pnand %p2181_p6, %p2175_p3 }
  0x10   :  { %2185 = shalt.err (!%p2182_p7)
}
  0x11   :  { %s2259_s28 = smov 128   ;;  %s2260_s29 = smov 8  }
  0x12   :  { %36 = dma.hbm_to_vmem [thread:$0]  %s2649_s1, 512, %s31_s19, [#allocation7], %s2259_s28, %s2259_s28, %s2260_s29  }
  0x13   :  { %s2261_s7 = smov [#allocation3]   ;;  %s2186_s11 = scalar_lea.hbm %s2648_s0, 256 }
  0x14   :  { %s18_s8 = sshll.u32 %s2261_s7, 4  ;;  %p2187_p8 = scmp.ne.s32.totalorder %s2648_s0, %s2186_s11  ;;  %s19_s8 = int_to_ptr.vmem [resolvable:$true] %s18_s8 }
  0x15   :  { %p2190_p9 = scmp.lt.u32.totalorder %s2186_s11, %s2648_s0 }
  0x17   :  { %p2192_p10 = pnand %p2190_p9, %p2187_p8 }
  0x19   :  { %2195 = shalt.err (!%p2192_p10)
}
  0x1a   :  { %s2196_s16 = scalar_lea.vmem %s19_s8, 256  ;;  %p2201_p12 = scmp.lt.s32.totalorder %s19_s8, %s19_s8 }
  0x1b   :  { %p2197_p11 = scmp.ne.s32.totalorder %s19_s8, %s2196_s16  ;;  %p2202_p13 = scmp.lt.s32.totalorder %s2196_s16, %s2196_s16 }
  0x1d   :  { %p2203_p0 = por %p2202_p13, %p2201_p12 }
  0x1f   :  { %p2204_p1 = pnand %p2203_p0, %p2197_p11 }
  0x21   :  { %2207 = shalt.err (!%p2204_p1)
}
  0x22   :  { %s2262_s1 = smov 32   ;;  %s2263_s17 = smov 2  }
  0x23   :  { %24 = dma.hbm_to_vmem [thread:$0]  %s2648_s0, 256, %s19_s8, [#allocation4], %s2262_s1, %s2262_s1, %s2263_s17  }
  0x24   :  { %s2264_s20 = smov [#allocation8]   ;;  %s2208_s24 = scalar_lea.hbm %s2650_s2, 512 }
  0x25   :  { %s42_s21 = sshll.u32 %s2264_s20, 4  ;;  %p2209_p2 = scmp.ne.s32.totalorder %s2650_s2, %s2208_s24  ;;  %s43_s21 = int_to_ptr.vmem [resolvable:$true] %s42_s21 }
  0x26   :  { %p2212_p3 = scmp.lt.u32.totalorder %s2208_s24, %s2650_s2 }
  0x28   :  { %p2214_p4 = pnand %p2212_p3, %p2209_p2 }
  0x2a   :  { %2217 = shalt.err (!%p2214_p4)
}
  0x2b   :  { %s2218_s6 = scalar_lea.vmem %s43_s21, 512  ;;  %p2223_p6 = scmp.lt.s32.totalorder %s43_s21, %s43_s21 }
  0x2c   :  { %p2219_p5 = scmp.ne.s32.totalorder %s43_s21, %s2218_s6  ;;  %p2224_p7 = scmp.lt.s32.totalorder %s2218_s6, %s2218_s6 }
  0x2e   :  { %p2225_p8 = por %p2224_p7, %p2223_p6 }
  0x30   :  { %p2226_p9 = pnand %p2225_p8, %p2219_p5 }
  0x32   :  { %2229 = shalt.err (!%p2226_p9)
}
  0x33   :  { %48 = dma.hbm_to_vmem [thread:$0]  %s2650_s2, 512, %s43_s21, [#allocation7], %s2259_s28, %s2259_s28, %s2260_s29  }
  0x34   :  { %2252 = dma.done.wait [#allocation4], 256  }
  0x35   :  { %2253 = vsyncadd [#allocation4], 4294967040 }
  0x36   :  { %2254 = dma.done.wait [#allocation7], 1024  }
  0x37   :  { %2255 = vsyncadd [#allocation7], 4294966272  ;;  %v2265_v0 = vmov 0.0|0.0   ;;  %vm66_vm0 = vcmask 254976   ;;  %vm2266_vm1 = vmmov 0   ;;  %v2267_v1 = vmov 0.0  }
  0x38   :  { %2006 = vmatprep.subr.bf16.mxu0 %v2265_v0  ;;  %2012 = vmatprep.subr.bf16.mxu1 %v2265_v0  ;;  %67 = vst.msk [vmem:[#allocation2] sm:$0x3] %vm66_vm0, %v2267_v1  ;;  %v68_v2 = vld [vmem:[#allocation6] sm:$0xff]  ;;  %v69_v3 = vld [vmem:[#allocation6 + $0x8] sm:$0xff]  ;;  %v70_v7 = vld [vmem:[#allocation6 + $0x10] sm:$0xff]  ;;  %s2268_s29 = smov 64  }
  0x39   :  { %1838 = vmatprep.mubr.msk.f32.mxu0 %vm2266_vm1, %v2267_v1  ;;  %1849 = vmatprep.mubr.msk.f32.mxu1 %vm2266_vm1, %v2267_v1  ;;  %v72_v4 = vld [vmem:[#allocation8] sm:$0xff]  ;;  %v2354_v5 = vpack.c.bf16 %v69_v3, %v68_v2  ;;  %v73_v6 = vld [vmem:[#allocation8 + $0x8] sm:$0xff]  ;;  %v71_v8 = vld [vmem:[#allocation6 + $0x18] sm:$0xff]  ;;  %vm86_vm2 = vcmask 261120   ;;  %vm301_vm3 = vcmask 517376   ;;  %vm484_vm4 = vcmask 779776  }
  0x3a   :  { %v2356_v9 = vpack.c.bf16 %v73_v6, %v72_v4  ;;  %v74_v10 = vld [vmem:[#allocation8 + $0x10] sm:$0xff]  ;;  %v75_v11 = vld [vmem:[#allocation8 + $0x18] sm:$0xff]  ;;  %v2359_v12 = vpack.c.bf16 %v71_v8, %v70_v7  ;;  %v1728_v13 = vld [vmem:[%s2652_s4] ss:$0 sm:$0xff]  ;;  %vm498_vm5 = vcmask 1042176   ;;  %s2271_s9 = smov [#allocation9]  }
  0x3b   :  { %2008 = vmatpush3.bf16.msra.mxu0 %v2354_v5  ;;  %v2366_v14 = vpack.c.bf16 %v75_v11, %v74_v10  ;;  %245 = vrot.lane.b32.xlu0 %v1728_v13, %s2268_s29  ;;  %v2371_v15 = vld [vmem:[#allocation3] sm:$0x3]  ;;  %v2398_v23 = vld [vmem:[%s2651_s3] ss:$0 sm:$0xff]  ;;  %v2404_v37 = vld [vmem:[#allocation3 + $0x2] sm:$0x3] }
  0x3c   :  { %2014 = vmatpush3.bf16.msra.mxu1 %v2356_v9  ;;  %2009 = vmatprep.subr.bf16.mxu0 %v2265_v0  ;;  %s2269_s3 = smov 96   ;;  %v2432_v60 = vld [vmem:[#allocation3 + $0x4] sm:$0x3]  ;;  %s1714_s10 = sshll.u32 %s2271_s9, 4  ;;  %s1715_s10 = int_to_ptr.vmem [resolvable:$true] %s1714_s10 }
  0x3d   :  { %2015 = vmatprep.subr.bf16.mxu1 %v2265_v0  ;;  %s2230_s11 = scalar_lea.vmem %s1715_s10, 128  ;;  %p2235_p11 = scmp.lt.s32.totalorder %s1715_s10, %s1715_s10 }
  0x3e   :  { %p2231_p10 = scmp.ne.s32.totalorder %s1715_s10, %s2230_s11  ;;  %p2236_p12 = scmp.lt.s32.totalorder %s2230_s11, %s2230_s11 }
  0x3f   :  { %2011 = vmatpush3.bf16.msra.mxu0 %v2359_v12  ;;  %v78_v16 = vld [vmem:[#allocation2] sm:$0x3] }
  0x40   :  { %2017 = vmatpush3.bf16.msra.mxu1 %v2366_v14  ;;  %2018 = vmatprep.subr.bf16.mxu0 %v2265_v0  ;;  %p2237_p13 = por %p2236_p12, %p2235_p11 }
  0x41   :  { %2024 = vmatprep.subr.bf16.mxu1 %v2265_v0 }
  0x42   :  { %1839 = vmatmul.mubr.msk.f32.vlgmr.msra.gmra.mrb[0].mxu0 %vm86_vm2, %v2371_v15  ;;  %p2238_p0 = pnand %p2237_p13, %p2231_p10 }
  0x43   :  { %1850 = vmatmul.mubr.msk.f32.vlgmr.msra.gmra.mrb[0].mxu1 %vm86_vm2, %v78_v16  ;;  %2020 = vmatpush3.bf16.msra.mxu0 %v2354_v5 }
  0x44   :  { %2026 = vmatpush3.bf16.msra.mxu1 %v2356_v9  ;;  %2021 = vmatprep.subr.bf16.mxu0 %v2265_v0 }
  0x45   :  { %2027 = vmatprep.subr.bf16.mxu1 %v2265_v0  ;;  %1860 = vmatprep.mubr.msk.f32.mxu0 %vm2266_vm1, %v2267_v1 }
  0x46   :  { %1871 = vmatprep.mubr.msk.f32.mxu1 %vm2266_vm1, %v2267_v1 }
  0x47   :  { %2023 = vmatpush3.bf16.msra.mxu0 %v2359_v12 }
  0x48   :  { %2029 = vmatpush3.bf16.msra.mxu1 %v2366_v14  ;;  %2030 = vmatprep.subr.bf16.mxu0 %v2265_v0 }
  0x49   :  { %2036 = vmatprep.subr.bf16.mxu1 %v2265_v0 }
  0x4a   :  { %1861 = vmatmul.mubr.msk.f32.vlgmr.msra.gmra.mrb[2].mxu0 %vm86_vm2, %v2404_v37 }
  0x4b   :  { %2032 = vmatpush3.bf16.msra.mxu0 %v2354_v5  ;;  %1882 = vmatprep.mubr.msk.f32.mxu0 %vm2266_vm1, %v2267_v1 }
  0x4c   :  { %2033 = vmatprep.subr.bf16.mxu0 %v2265_v0 }
  0x4f   :  { %2035 = vmatpush3.bf16.msra.mxu0 %v2359_v12 }
  0x50   :  { %2042 = vmatprep.subr.bf16.mxu0 %v2265_v0 }
  0x52   :  { %1883 = vmatmul.mubr.msk.f32.vlgmr.msra.gmra.mrb[4].mxu0 %vm86_vm2, %v2432_v60 }
  0x53   :  { %2044 = vmatpush3.bf16.msra.mxu0 %v2354_v5  ;;  %1904 = vmatprep.mubr.msk.f32.mxu0 %vm2266_vm1, %v2267_v1 }
  0x54   :  { %2045 = vmatprep.subr.bf16.mxu0 %v2265_v0 }
  0x57   :  { %2047 = vmatpush3.bf16.msra.mxu0 %v2359_v12 }
  0x58   :  { %2054 = vmatprep.subr.bf16.mxu0 %v2265_v0 }
  0xad   :  { %v2391_v17 = vpop.permute.xlu0 %245 }
 0x115   :  { %v156_v18 = vpop.f32.mrb[0].mxu0 }
 0x116   :  { %v229_v19 = vpop.f32.mrb[0].mxu1  ;;  %v1840_v20 = vpop.f32.mrb[1].mxu0  ;;  %v157_v24 = vadd.f32 %v2398_v23, %v156_v18 }
 0x117   :  { %v248_v21 = vadd.f32 %v2391_v17, %v229_v19  ;;  %v1851_v22 = vpop.f32.mrb[1].mxu1 }
 0x118   :  { %v233_v25 = vadd.f32 %v229_v19, %v157_v24 }
 0x119   :  { %250 = vrot.lane.b32.xlu0 %v248_v21, %s2268_s29 }
 0x11a   :  { %v1727_v26 = vmul.f32 -1.442695, %v233_v25 }
 0x11c   :  { %2116 = vpow2.f32 %v1727_v26 }
 0x11d   :  { %v374_v42 = vpop.f32.mrb[2].mxu0 }
 0x11e   :  { %v1862_v43 = vpop.f32.mrb[3].mxu0  ;;  %v375_v48 = vadd.f32 %v2398_v23, %v374_v42 }
 0x125   :  { %v571_v3 = vpop.f32.mrb[4].mxu0 }
 0x126   :  { %v2117_v27 = vpop.eup %2116  ;;  %v1884_v4 = vpop.f32.mrb[5].mxu0  ;;  %v572_v11 = vadd.f32 %v2398_v23, %v571_v3 }
 0x127   :  { %v237_v28 = vadd.f32 1.0, %v2117_v27 }
 0x129   :  { %2118 = vrcp.f32 %v237_v28  ;;  %v2460_v28 = vld [vmem:[#allocation3 + $0x6] sm:$0x3] }
 0x12a   :  { %1905 = vmatmul.mubr.msk.f32.vlgmr.msra.gmra.mrb[6].mxu0 %vm86_vm2, %v2460_v28 }
 0x12b   :  { %2056 = vmatpush3.bf16.msra.mxu0 %v2354_v5  ;;  %1926 = vmatprep.mubr.msk.f32.mxu0 %vm2266_vm1, %v2267_v1 }
 0x12c   :  { %2057 = vmatprep.subr.bf16.mxu0 %v2265_v0 }
 0x12f   :  { %2059 = vmatpush3.bf16.msra.mxu0 %v2359_v12 }
 0x130   :  { %2066 = vmatprep.subr.bf16.mxu0 %v2265_v0 }
 0x133   :  { %v2119_v29 = vpop.eup %2118 }
 0x18b   :  { %v251_v30 = vpop.permute.xlu0 %250 }
 0x18c   :  { %v253_v31 = vmul.f32 %v2119_v29, %v251_v30 }
 0x18e   :  { %255 = vrot.lane.b32.xlu1 %v253_v31, %s2268_s29 }
 0x200   :  { %v256_v32 = vpop.permute.xlu1 %255 }
 0x201   :  { %v258_v33 = vadd.f32 %v256_v32, %v157_v24 }
 0x203   :  { %2120 = vtanh.f32 %v258_v33  ;;  %v777_v33 = vpop.f32.mrb[6].mxu0 }
 0x20d   :  { %v2121_v34 = vpop.eup %2120 }
 0x20e   :  { %261 = vrot.lane.b32.xlu1 %v2121_v34, %s2268_s29 }
 0x280   :  { %v262_v35 = vpop.permute.xlu1 %261 }
 0x281   :  { %v264_v36 = vsub.f32 %v78_v16, %v262_v35 }
 0x283   :  { %266 = vrot.lane.b32.xlu0 %v264_v36, %s2262_s1 }
 0x2f5   :  { %v267_v38 = vpop.permute.xlu0 %266 }
 0x2f6   :  { %v269_v39 = vmul.f32 %v2119_v29, %v267_v38 }
 0x2f8   :  { %271 = vrot.lane.b32.xlu1 %v269_v39, %s2262_s1 }
 0x36a   :  { %v272_v40 = vpop.permute.xlu1 %271 }
 0x36b   :  { %v2415_v41 = vadd.f32 %v2121_v34, %v272_v40  ;;  %v1906_v34 = vpop.f32.mrb[7].mxu0  ;;  %v778_v40 = vadd.f32 %v2398_v23, %v777_v33 }
 0x36d   :  { %379 = vrot.lane.b32.xlu0 %v2415_v41, %s2268_s29 }
 0x3df   :  { %v380_v44 = vpop.permute.xlu0 %379 }
 0x3e0   :  { %1872 = vmatmul.mubr.msk.f32.vlgmr.msra.gmra.mrb[2].mxu1 %vm86_vm2, %v380_v44 }
 0x3e1   :  { %2038 = vmatpush3.bf16.msra.mxu1 %v2356_v9  ;;  %1893 = vmatprep.mubr.msk.f32.mxu1 %vm2266_vm1, %v2267_v1 }
 0x3e2   :  { %2039 = vmatprep.subr.bf16.mxu1 %v2265_v0 }
 0x3e5   :  { %2041 = vmatpush3.bf16.msra.mxu1 %v2366_v14 }
 0x3e6   :  { %2048 = vmatprep.subr.bf16.mxu1 %v2265_v0 }
 0x4b3   :  { %v449_v45 = vpop.f32.mrb[2].mxu1 }
 0x4b4   :  { %v460_v46 = vadd.f32 %v449_v45, %v2391_v17  ;;  %v1873_v47 = vpop.f32.mrb[3].mxu1  ;;  %v453_v49 = vadd.f32 %v449_v45, %v375_v48 }
 0x4b6   :  { %462 = vrot.lane.b32.xlu1 %v460_v46, %s2268_s29  ;;  %v1731_v50 = vmul.f32 -1.442695, %v453_v49 }
 0x4b8   :  { %2122 = vpow2.f32 %v1731_v50 }
 0x4c2   :  { %v2123_v51 = vpop.eup %2122 }
 0x4c3   :  { %v457_v52 = vadd.f32 1.0, %v2123_v51 }
 0x4c5   :  { %2124 = vrcp.f32 %v457_v52 }
 0x4cf   :  { %v2125_v53 = vpop.eup %2124 }
 0x528   :  { %v463_v54 = vpop.permute.xlu1 %462 }
 0x529   :  { %v465_v55 = vmul.f32 %v2125_v53, %v463_v54 }
 0x52b   :  { %467 = vrot.lane.b32.xlu0 %v465_v55, %s2268_s29 }
 0x59d   :  { %v468_v56 = vpop.permute.xlu0 %467 }
 0x59e   :  { %v470_v57 = vadd.f32 %v468_v56, %v375_v48 }
 0x5a0   :  { %2126 = vtanh.f32 %v470_v57 }
 0x5aa   :  { %v2127_v58 = vpop.eup %2126 }
 0x5ab   :  { %v472_v59 = vsub.f32 %v2415_v41, %v2127_v58 }
 0x5ad   :  { %474 = vrot.lane.b32.xlu1 %v472_v59, %s2269_s3 }
 0x61f   :  { %v475_v61 = vpop.permute.xlu1 %474 }
 0x620   :  { %v477_v62 = vmul.f32 %v2125_v53, %v475_v61  ;;  %v2488_v53 = vld [vmem:[#allocation3 + $0x8] sm:$0x3] }
 0x621   :  { %1927 = vmatmul.mubr.msk.f32.vlgmr.msra.gmra.mrb[8].mxu0 %vm86_vm2, %v2488_v53 }
 0x622   :  { %479 = vrot.lane.b32.xlu0 %v477_v62, %s2262_s1  ;;  %2068 = vmatpush3.bf16.msra.mxu0 %v2354_v5 }
 0x623   :  { %1948 = vmatprep.mubr.msk.f32.mxu0 %vm2266_vm1, %v2267_v1  ;;  %2069 = vmatprep.subr.bf16.mxu0 %v2265_v0 }
 0x626   :  { %2071 = vmatpush3.bf16.msra.mxu0 %v2359_v12 }
 0x627   :  { %2078 = vmatprep.subr.bf16.mxu0 %v2265_v0 }
 0x694   :  { %v480_v63 = vpop.permute.xlu0 %479 }
 0x695   :  { %v2443_v2 = vadd.f32 %v2127_v58, %v480_v63 }
 0x697   :  { %576 = vrot.lane.b32.xlu1 %v2443_v2, %s2268_s29 }
 0x6f4   :  { %v972_v58 = vpop.f32.mrb[8].mxu0 }
 0x6f5   :  { %v1928_v59 = vpop.f32.mrb[9].mxu0  ;;  %v973_v4 = vadd.f32 %v2398_v23, %v972_v58 }
 0x709   :  { %v577_v6 = vpop.permute.xlu1 %576 }
 0x70a   :  { %1894 = vmatmul.mubr.msk.f32.vlgmr.msra.gmra.mrb[4].mxu1 %vm86_vm2, %v577_v6 }
 0x70b   :  { %2050 = vmatpush3.bf16.msra.mxu1 %v2356_v9  ;;  %1915 = vmatprep.mubr.msk.f32.mxu1 %vm2266_vm1, %v2267_v1 }
 0x70c   :  { %2051 = vmatprep.subr.bf16.mxu1 %v2265_v0 }
 0x70f   :  { %2053 = vmatpush3.bf16.msra.mxu1 %v2366_v14 }
 0x710   :  { %2060 = vmatprep.subr.bf16.mxu1 %v2265_v0 }
 0x7dd   :  { %v646_v7 = vpop.f32.mrb[4].mxu1 }
 0x7de   :  { %v657_v8 = vadd.f32 %v646_v7, %v2391_v17  ;;  %v1895_v10 = vpop.f32.mrb[5].mxu1  ;;  %v650_v13 = vadd.f32 %v646_v7, %v572_v11 }
 0x7e0   :  { %659 = vrot.lane.b32.xlu0 %v657_v8, %s2268_s29  ;;  %v1734_v16 = vmul.f32 -1.442695, %v650_v13 }
 0x7e2   :  { %2128 = vpow2.f32 %v1734_v16 }
 0x7ec   :  { %v2129_v18 = vpop.eup %2128 }
 0x7ed   :  { %v654_v19 = vadd.f32 1.0, %v2129_v18 }
 0x7ef   :  { %2130 = vrcp.f32 %v654_v19 }
 0x7f9   :  { %v2131_v20 = vpop.eup %2130 }
 0x852   :  { %v660_v21 = vpop.permute.xlu0 %659 }
 0x853   :  { %v662_v22 = vmul.f32 %v2131_v20, %v660_v21 }
 0x855   :  { %664 = vrot.lane.b32.xlu1 %v662_v22, %s2268_s29  ;;  %v2516_v22 = vld [vmem:[#allocation3 + $0xa] sm:$0x3] }
 0x856   :  { %1949 = vmatmul.mubr.msk.f32.vlgmr.msra.gmra.mrb[10].mxu0 %vm86_vm2, %v2516_v22 }
 0x857   :  { %2080 = vmatpush3.bf16.msra.mxu0 %v2354_v5  ;;  %1970 = vmatprep.mubr.msk.f32.mxu0 %vm2266_vm1, %v2267_v1 }
 0x858   :  { %2081 = vmatprep.subr.bf16.mxu0 %v2265_v0 }
 0x85b   :  { %2083 = vmatpush3.bf16.msra.mxu0 %v2359_v12 }
 0x85c   :  { %2090 = vmatprep.subr.bf16.mxu0 %v2265_v0 }
 0x8c7   :  { %v665_v24 = vpop.permute.xlu1 %664 }
 0x8c8   :  { %v667_v25 = vadd.f32 %v665_v24, %v572_v11 }
 0x8ca   :  { %2132 = vtanh.f32 %v667_v25 }
 0x8d4   :  { %v2133_v26 = vpop.eup %2132 }
 0x8d5   :  { %v669_v27 = vsub.f32 %v2443_v2, %v2133_v26 }
 0x8d7   :  { %671 = vrot.lane.b32.xlu0 %v669_v27, %s2269_s3 }
 0x949   :  { %v672_v29 = vpop.permute.xlu0 %671 }
 0x94a   :  { %v674_v30 = vmul.f32 %v2131_v20, %v672_v29  ;;  %v1178_v29 = vpop.f32.mrb[10].mxu0 }
 0x94c   :  { %676 = vrot.lane.b32.xlu1 %v674_v30, %s2262_s1  ;;  %v1950_v30 = vpop.f32.mrb[11].mxu0 }
 0x9be   :  { %v677_v31 = vpop.permute.xlu1 %676 }
 0x9bf   :  { %v2471_v32 = vadd.f32 %v2133_v26, %v677_v31 }
 0x9c1   :  { %782 = vrot.lane.b32.xlu0 %v2471_v32, %s2268_s29 }
 0xa33   :  { %v783_v35 = vpop.permute.xlu0 %782 }
 0xa34   :  { %1916 = vmatmul.mubr.msk.f32.vlgmr.msra.gmra.mrb[6].mxu1 %vm86_vm2, %v783_v35 }
 0xa35   :  { %2062 = vmatpush3.bf16.msra.mxu1 %v2356_v9  ;;  %1937 = vmatprep.mubr.msk.f32.mxu1 %vm2266_vm1, %v2267_v1 }
 0xa36   :  { %2063 = vmatprep.subr.bf16.mxu1 %v2265_v0 }
 0xa39   :  { %2065 = vmatpush3.bf16.msra.mxu1 %v2366_v14 }
 0xa3a   :  { %2072 = vmatprep.subr.bf16.mxu1 %v2265_v0 }
 0xb07   :  { %v852_v36 = vpop.f32.mrb[6].mxu1 }
 0xb08   :  { %v863_v38 = vadd.f32 %v852_v36, %v2391_v17  ;;  %v1917_v39 = vpop.f32.mrb[7].mxu1  ;;  %v856_v42 = vadd.f32 %v852_v36, %v778_v40  ;;  %v1179_v36 = vadd.f32 %v2398_v23, %v1178_v29 }
 0xb0a   :  { %865 = vrot.lane.b32.xlu1 %v863_v38, %s2268_s29  ;;  %v1737_v43 = vmul.f32 -1.442695, %v856_v42 }
 0xb0c   :  { %2134 = vpow2.f32 %v1737_v43 }
 0xb16   :  { %v2135_v44 = vpop.eup %2134 }
 0xb17   :  { %v860_v45 = vadd.f32 1.0, %v2135_v44 }
 0xb19   :  { %2136 = vrcp.f32 %v860_v45 }
 0xb23   :  { %v2137_v46 = vpop.eup %2136 }
 0xb7c   :  { %v866_v47 = vpop.permute.xlu1 %865 }
 0xb7d   :  { %v868_v48 = vmul.f32 %v2137_v46, %v866_v47 }
 0xb7f   :  { %870 = vrot.lane.b32.xlu0 %v868_v48, %s2268_s29 }
 0xbf1   :  { %v871_v49 = vpop.permute.xlu0 %870 }
 0xbf2   :  { %v873_v50 = vadd.f32 %v871_v49, %v778_v40 }
 0xbf4   :  { %2138 = vtanh.f32 %v873_v50  ;;  %v2544_v50 = vld [vmem:[#allocation3 + $0xc] sm:$0x3] }
 0xbf5   :  { %1971 = vmatmul.mubr.msk.f32.vlgmr.msra.gmra.mrb[12].mxu0 %vm86_vm2, %v2544_v50 }
 0xbf6   :  { %2092 = vmatpush3.bf16.msra.mxu0 %v2354_v5  ;;  %1992 = vmatprep.mubr.msk.f32.mxu0 %vm2266_vm1, %v2267_v1 }
 0xbf7   :  { %2093 = vmatprep.subr.bf16.mxu0 %v2265_v0 }
 0xbfa   :  { %2095 = vmatpush3.bf16.msra.mxu0 %v2359_v12 }
 0xbfe   :  { %v2139_v51 = vpop.eup %2138 }
 0xbff   :  { %v875_v52 = vsub.f32 %v2471_v32, %v2139_v51 }
 0xc01   :  { %877 = vrot.lane.b32.xlu1 %v875_v52, %s2269_s3 }
 0xc73   :  { %v878_v54 = vpop.permute.xlu1 %877 }
 0xc74   :  { %v880_v55 = vmul.f32 %v2137_v46, %v878_v54 }
 0xc76   :  { %882 = vrot.lane.b32.xlu0 %v880_v55, %s2262_s1 }
 0xce8   :  { %v883_v56 = vpop.permute.xlu0 %882 }
 0xce9   :  { %v2499_v57 = vadd.f32 %v2139_v51, %v883_v56  ;;  %v1373_v56 = vpop.f32.mrb[12].mxu0 }
 0xcea   :  { %v1972_v58 = vpop.f32.mrb[13].mxu0 }
 0xceb   :  { %977 = vrot.lane.b32.xlu1 %v2499_v57, %s2268_s29 }
 0xd5d   :  { %v978_v61 = vpop.permute.xlu1 %977 }
 0xd5e   :  { %1938 = vmatmul.mubr.msk.f32.vlgmr.msra.gmra.mrb[8].mxu1 %vm86_vm2, %v978_v61 }
 0xd5f   :  { %2074 = vmatpush3.bf16.msra.mxu1 %v2356_v9  ;;  %1959 = vmatprep.mubr.msk.f32.mxu1 %vm2266_vm1, %v2267_v1 }
 0xd60   :  { %2075 = vmatprep.subr.bf16.mxu1 %v2265_v0 }
 0xd63   :  { %2077 = vmatpush3.bf16.msra.mxu1 %v2366_v14 }
 0xd64   :  { %2084 = vmatprep.subr.bf16.mxu1 %v2265_v0 }
 0xe31   :  { %v1047_v62 = vpop.f32.mrb[8].mxu1 }
 0xe32   :  { %v1058_v63 = vadd.f32 %v1047_v62, %v2391_v17  ;;  %v1939_v3 = vpop.f32.mrb[9].mxu1  ;;  %v1051_v6 = vadd.f32 %v1047_v62, %v973_v4  ;;  %v1374_v62 = vadd.f32 %v2398_v23, %v1373_v56 }
 0xe34   :  { %1060 = vrot.lane.b32.xlu0 %v1058_v63, %s2268_s29  ;;  %v1740_v7 = vmul.f32 -1.442695, %v1051_v6 }
 0xe36   :  { %2140 = vpow2.f32 %v1740_v7 }
 0xe40   :  { %v2141_v8 = vpop.eup %2140 }
 0xe41   :  { %v1055_v10 = vadd.f32 1.0, %v2141_v8 }
 0xe43   :  { %2142 = vrcp.f32 %v1055_v10 }
 0xe4d   :  { %v2143_v11 = vpop.eup %2142 }
 0xea6   :  { %v1061_v13 = vpop.permute.xlu0 %1060 }
 0xea7   :  { %v1063_v16 = vmul.f32 %v2143_v11, %v1061_v13 }
 0xea9   :  { %1065 = vrot.lane.b32.xlu1 %v1063_v16, %s2268_s29 }
 0xf1b   :  { %v1066_v18 = vpop.permute.xlu1 %1065 }
 0xf1c   :  { %v1068_v19 = vadd.f32 %v1066_v18, %v973_v4 }
 0xf1e   :  { %2144 = vtanh.f32 %v1068_v19 }
 0xf28   :  { %v2145_v20 = vpop.eup %2144 }
 0xf29   :  { %v1070_v21 = vsub.f32 %v2499_v57, %v2145_v20 }
 0xf2b   :  { %1072 = vrot.lane.b32.xlu0 %v1070_v21, %s2269_s3 }
 0xf9d   :  { %v1073_v24 = vpop.permute.xlu0 %1072 }
 0xf9e   :  { %v1075_v25 = vmul.f32 %v2143_v11, %v1073_v24  ;;  %v2570_v11 = vld [vmem:[#allocation3 + $0xe] sm:$0x3] }
 0xf9f   :  { %1993 = vmatmul.mubr.msk.f32.vlgmr.msra.gmra.mrb[14].mxu0 %vm86_vm2, %v2570_v11 }
 0xfa0   :  { %1077 = vrot.lane.b32.xlu1 %v1075_v25, %s2262_s1 }
0x1012   :  { %v1078_v26 = vpop.permute.xlu1 %1077 }
0x1013   :  { %v2527_v27 = vadd.f32 %v2145_v20, %v1078_v26 }
0x1015   :  { %1183 = vrot.lane.b32.xlu0 %v2527_v27, %s2268_s29 }
0x1072   :  { %v1579_v20 = vpop.f32.mrb[14].mxu0 }
0x1073   :  { %v1994_v21 = vpop.f32.mrb[15].mxu0  ;;  %v1580_v30 = vadd.f32 %v2398_v23, %v1579_v20 }
0x1087   :  { %v1184_v31 = vpop.permute.xlu0 %1183 }
0x1088   :  { %1960 = vmatmul.mubr.msk.f32.vlgmr.msra.gmra.mrb[10].mxu1 %vm86_vm2, %v1184_v31 }
0x1089   :  { %2086 = vmatpush3.bf16.msra.mxu1 %v2356_v9  ;;  %1981 = vmatprep.mubr.msk.f32.mxu1 %vm2266_vm1, %v2267_v1 }
0x108a   :  { %2087 = vmatprep.subr.bf16.mxu1 %v2265_v0 }
0x108d   :  { %2089 = vmatpush3.bf16.msra.mxu1 %v2366_v14 }
0x108e   :  { %2096 = vmatprep.subr.bf16.mxu1 %v2265_v0 }
0x115b   :  { %v1253_v33 = vpop.f32.mrb[10].mxu1 }
0x115c   :  { %v1264_v34 = vadd.f32 %v1253_v33, %v2391_v17  ;;  %v1961_v35 = vpop.f32.mrb[11].mxu1  ;;  %v1257_v38 = vadd.f32 %v1253_v33, %v1179_v36 }
0x115e   :  { %1266 = vrot.lane.b32.xlu1 %v1264_v34, %s2268_s29  ;;  %v1743_v39 = vmul.f32 -1.442695, %v1257_v38 }
0x1160   :  { %2146 = vpow2.f32 %v1743_v39 }
0x116a   :  { %v2147_v40 = vpop.eup %2146 }
0x116b   :  { %v1261_v42 = vadd.f32 1.0, %v2147_v40 }
0x116d   :  { %2148 = vrcp.f32 %v1261_v42 }
0x1177   :  { %v2149_v43 = vpop.eup %2148 }
0x11d0   :  { %v1267_v44 = vpop.permute.xlu1 %1266 }
0x11d1   :  { %v1269_v45 = vmul.f32 %v2149_v43, %v1267_v44  ;;  %v280_v44 = vlaneseq }
0x11d3   :  { %1271 = vrot.lane.b32.xlu0 %v1269_v45, %s2268_s29 }
0x1245   :  { %v1272_v46 = vpop.permute.xlu0 %1271 }
0x1246   :  { %v1274_v47 = vadd.f32 %v1272_v46, %v1179_v36  ;;  %v281_v46 = vshrl.u32 %v280_v44, 7 }
0x1248   :  { %2150 = vtanh.f32 %v1274_v47  ;;  %v275_v47 = vmax.f32 %v2415_v41, 0.0 }
0x1252   :  { %v2151_v48 = vpop.eup %2150 }
0x1253   :  { %v1276_v49 = vsub.f32 %v2527_v27, %v2151_v48 }
0x1255   :  { %1278 = vrot.lane.b32.xlu1 %v1276_v49, %s2269_s3 }
0x12c7   :  { %v1279_v51 = vpop.permute.xlu1 %1278 }
0x12c8   :  { %v1281_v52 = vmul.f32 %v2149_v43, %v1279_v51  ;;  %v1081_v51 = vmax.f32 %v2527_v27, 0.0  ;;  %v1289_v27 = vmax.f32 %v2516_v22, 0.0  ;;  %v693_v22 = vmax.f32 %v2432_v60, 0.0 }
0x12ca   :  { %1283 = vrot.lane.b32.xlu0 %v1281_v52, %s2262_s1 }
0x133c   :  { %v1284_v54 = vpop.permute.xlu0 %1283 }
0x133d   :  { %v2554_v55 = vadd.f32 %v2151_v48, %v1284_v54  ;;  %v289_v54 = vmax.f32 %v2371_v15, 0.0 }
0x133f   :  { %1378 = vrot.lane.b32.xlu1 %v2554_v55, %s2268_s29 }
0x13b1   :  { %v1379_v5 = vpop.permute.xlu1 %1378 }
0x13b2   :  { %1982 = vmatmul.mubr.msk.f32.vlgmr.msra.gmra.mrb[12].mxu1 %vm86_vm2, %v1379_v5  ;;  %v1094_v5 = vmax.f32 %v2488_v53, 0.0 }
0x13b3   :  { %2098 = vmatpush3.bf16.msra.mxu1 %v2356_v9  ;;  %2003 = vmatprep.mubr.msk.f32.mxu1 %vm2266_vm1, %v2267_v1 }
0x13b4   :  { %2099 = vmatprep.subr.bf16.mxu1 %v2265_v0 }
0x13b7   :  { %2101 = vmatpush3.bf16.msra.mxu1 %v2366_v14 }
0x1485   :  { %v1448_v12 = vpop.f32.mrb[12].mxu1 }
0x1486   :  { %v1459_v59 = vadd.f32 %v1448_v12, %v2391_v17  ;;  %v1983_v61 = vpop.f32.mrb[13].mxu1  ;;  %v1452_v63 = vadd.f32 %v1448_v12, %v1374_v62  ;;  %v486_v12 = vmax.f32 %v2404_v37, 0.0 }
0x1488   :  { %1461 = vrot.lane.b32.xlu0 %v1459_v59, %s2268_s29  ;;  %v1746_v3 = vmul.f32 -1.442695, %v1452_v63 }
0x148a   :  { %2152 = vpow2.f32 %v1746_v3 }
0x1494   :  { %v2153_v4 = vpop.eup %2152 }
0x1495   :  { %v1456_v9 = vadd.f32 1.0, %v2153_v4 }
0x1497   :  { %2154 = vrcp.f32 %v1456_v9 }
0x14a1   :  { %v2155_v6 = vpop.eup %2154 }
0x14fa   :  { %v1462_v1 = vpop.permute.xlu0 %1461 }
0x14fb   :  { %v1464_v7 = vmul.f32 %v2155_v6, %v1462_v1  ;;  %v483_v1 = vmax.f32 %v2443_v2, 0.0 }
0x14fd   :  { %1466 = vrot.lane.b32.xlu1 %v1464_v7, %s2268_s29 }
0x156f   :  { %v1467_v0 = vpop.permute.xlu1 %1466 }
0x1570   :  { %v1469_v14 = vadd.f32 %v1467_v0, %v1374_v62  ;;  %v680_v62 = vmax.f32 %v2471_v32, 0.0  ;;  %v888_v0 = vmax.f32 %v2460_v28, 0.0 }
0x1572   :  { %2156 = vtanh.f32 %v1469_v14  ;;  %v1287_v14 = vmax.f32 %v2554_v55, 0.0 }
0x157c   :  { %v2157_v8 = vpop.eup %2156 }
0x157d   :  { %v1471_v10 = vsub.f32 %v2554_v55, %v2157_v8 }
0x157f   :  { %1473 = vrot.lane.b32.xlu0 %v1471_v10, %s2269_s3 }
0x15f1   :  { %v1474_v13 = vpop.permute.xlu0 %1473 }
0x15f2   :  { %v1476_v16 = vmul.f32 %v2155_v6, %v1474_v13  ;;  %v1495_v6 = vmax.f32 %v2544_v50, 0.0  ;;  %v1690_v50 = vmax.f32 %v2570_v11, 0.0 }
0x15f4   :  { %1478 = vrot.lane.b32.xlu1 %v1476_v16, %s2262_s1 }
0x1666   :  { %v1479_v18 = vpop.permute.xlu1 %1478 }
0x1667   :  { %v2575_v19 = vadd.f32 %v2157_v8, %v1479_v18 }
0x1669   :  { %1584 = vrot.lane.b32.xlu0 %v2575_v19, %s2268_s29  ;;  %v1482_v3 = vmax.f32 %v2575_v19, 0.0 }
0x16db   :  { %v1585_v24 = vpop.permute.xlu0 %1584 }
0x16dc   :  { %2004 = vmatmul.mubr.msk.f32.vlgmr.msra.gmra.mrb[14].mxu1 %vm86_vm2, %v1585_v24 }
0x17af   :  { %v1654_v25 = vpop.f32.mrb[14].mxu1 }
0x17b0   :  { %v1665_v26 = vadd.f32 %v1654_v25, %v2391_v17  ;;  %v2005_v29 = vpop.f32.mrb[15].mxu1  ;;  %v1658_v31 = vadd.f32 %v1654_v25, %v1580_v30  ;;  %v2270_v17 = vmov 1983009808  }
0x17b1   :  { %v278_v43 = vunpack.c.l.s4 %v2270_v17 }
0x17b2   :  { %1667 = vrot.lane.b32.xlu1 %v1665_v26, %s2268_s29  ;;  %v1749_v33 = vmul.f32 -1.442695, %v1658_v31 }
0x17b3   :  { %v279_v45 = vunpack.c.0.s8 %v278_v43 }
0x17b4   :  { %2158 = vpow2.f32 %v1749_v33 }
0x17b5   :  { %v282_v49 = vsub.s32 %v279_v45, %v281_v46 }
0x17b7   :  { %v283_v52 = vrot.slane %v275_v47, %v282_v49  ;;  %v1089_v56 = vrot.slane %v1081_v51, %v282_v49  ;;  %v297_v58 = vrot.slane %v289_v54, %v282_v49  ;;  %v1102_v41 = vrot.slane %v1094_v5, %v282_v49 }
0x17b8   :  { %v494_v59 = vrot.slane %v486_v12, %v282_v49  ;;  %v1297_v61 = vrot.slane %v1289_v27, %v282_v49  ;;  %v688_v37 = vrot.slane %v680_v62, %v282_v49  ;;  %v1490_v9 = vrot.slane %v1482_v3, %v282_v49 }
0x17b9   :  { %v701_v32 = vrot.slane %v693_v22, %v282_v49  ;;  %v1503_v60 = vrot.slane %v1495_v6, %v282_v49  ;;  %v896_v2 = vrot.slane %v888_v0, %v282_v49  ;;  %v1698_v13 = vrot.slane %v1690_v50, %v282_v49 }
0x17be   :  { %v2159_v34 = vpop.eup %2158 }
0x17bf   :  { %v1662_v35 = vadd.f32 1.0, %v2159_v34 }
0x17c1   :  { %2160 = vrcp.f32 %v1662_v35 }
0x17cb   :  { %v2161_v36 = vpop.eup %2160 }
0x1824   :  { %v1668_v38 = vpop.permute.xlu1 %1667 }
0x1825   :  { %v1670_v39 = vmul.f32 %v2161_v36, %v1668_v38 }
0x1827   :  { %1672 = vrot.lane.b32.xlu0 %v1670_v39, %s2268_s29 }
0x1899   :  { %v1673_v40 = vpop.permute.xlu0 %1672 }
0x189a   :  { %v1675_v42 = vadd.f32 %v1673_v40, %v1580_v30 }
0x189c   :  { %2162 = vtanh.f32 %v1675_v42 }
0x18a6   :  { %v2584_v23 = vpop.eup %2162 }
0x18a7   :  { %v1677_v48 = vsub.f32 %v2575_v19, %v2584_v23  ;;  %v886_v19 = vmax.f32 %v2499_v57, 0.0 }
0x18a9   :  { %1679 = vrot.lane.b32.xlu1 %v1677_v48, %s2269_s3 }
0x18ad   :  { %284 = vrot.lane.b32.xlu1 %v283_v52, %s2268_s29 }
0x18b1   :  { %1090 = vrot.lane.b32.xlu1 %v1089_v56, %s2268_s29 }
0x18b5   :  { %298 = vrot.lane.b32.xlu1 %v297_v58, %s2262_s1 }
0x18b9   :  { %1103 = vrot.lane.b32.xlu1 %v1102_v41, %s2262_s1 }
0x18bd   :  { %495 = vrot.lane.b32.xlu1 %v494_v59, %s2269_s3 }
0x18c1   :  { %1298 = vrot.lane.b32.xlu1 %v1297_v61, %s2269_s3 }
0x191b   :  { %v1680_v15 = vpop.permute.xlu1 %1679 }
0x191c   :  { %v1682_v63 = vmul.f32 %v2161_v36, %v1680_v15 }
0x191e   :  { %1684 = vrot.lane.b32.xlu0 %v1682_v63, %s2262_s1 }
0x191f   :  { %v285_v53 = vpop.permute.xlu1 %284 }
0x1920   :  { %288 = vst.msk [vmem:[#allocation9] sm:$0x3] %vm66_vm0, %v285_v53 }
0x1922   :  { %689 = vrot.lane.b32.xlu0 %v688_v37, %s2268_s29 }
0x1923   :  { %v1091_v4 = vpop.permute.xlu1 %1090 }
0x1924   :  { %1093 = vst.msk [vmem:[#allocation9 + $0x4] sm:$0x3] %vm66_vm0, %v1091_v4 }
0x1926   :  { %1491 = vrot.lane.b32.xlu0 %v1490_v9, %s2268_s29 }
0x1927   :  { %v299_v7 = vpop.permute.xlu1 %298 }
0x1928   :  { %302 = vst.msk [vmem:[#allocation9] sm:$0x3] %vm301_vm3, %v299_v7 }
0x1929   :  { %485 = vst.msk [vmem:[#allocation9] sm:$0x3] %vm484_vm4, %v483_v1 }
0x192a   :  { %702 = vrot.lane.b32.xlu0 %v701_v32, %s2262_s1 }
0x192b   :  { %v1104_v8 = vpop.permute.xlu1 %1103 }
0x192c   :  { %1106 = vst.msk [vmem:[#allocation9 + $0x4] sm:$0x3] %vm301_vm3, %v1104_v8 }
0x192d   :  { %1288 = vst.msk [vmem:[#allocation9 + $0x4] sm:$0x3] %vm484_vm4, %v1287_v14 }
0x192e   :  { %1504 = vrot.lane.b32.xlu0 %v1503_v60, %s2262_s1 }
0x192f   :  { %v496_v10 = vpop.permute.xlu1 %495 }
0x1930   :  { %499 = vst.msk [vmem:[#allocation9] sm:$0x3] %vm498_vm5, %v496_v10 }
0x1932   :  { %897 = vrot.lane.b32.xlu0 %v896_v2, %s2269_s3 }
0x1933   :  { %v1299_v28 = vpop.permute.xlu1 %1298 }
0x1934   :  { %1301 = vst.msk [vmem:[#allocation9 + $0x4] sm:$0x3] %vm498_vm5, %v1299_v28 }
0x1936   :  { %1699 = vrot.lane.b32.xlu0 %v1698_v13, %s2269_s3 }
0x1990   :  { %v1685_v55 = vpop.permute.xlu0 %1684 }
0x1991   :  { %v1687_v16 = vadd.f32 %v2584_v23, %v1685_v55 }
0x1993   :  { %1704 = vrot.lane.b32.xlu1 %v1687_v16, %s2268_s29  ;;  %v1688_v21 = vmax.f32 %v1687_v16, 0.0 }
0x1994   :  { %v690_v18 = vpop.permute.xlu0 %689 }
0x1995   :  { %692 = vst.msk [vmem:[#allocation9 + $0x2] sm:$0x3] %vm66_vm0, %v690_v18 }
0x1998   :  { %v1492_v11 = vpop.permute.xlu0 %1491 }
0x1999   :  { %1494 = vst.msk [vmem:[#allocation9 + $0x6] sm:$0x3] %vm66_vm0, %v1492_v11 }
0x199c   :  { %v703_v20 = vpop.permute.xlu0 %702 }
0x199d   :  { %705 = vst.msk [vmem:[#allocation9 + $0x2] sm:$0x3] %vm301_vm3, %v703_v20 }
0x199e   :  { %887 = vst.msk [vmem:[#allocation9 + $0x2] sm:$0x3] %vm484_vm4, %v886_v19 }
0x19a0   :  { %v1505_v24 = vpop.permute.xlu0 %1504 }
0x19a1   :  { %1507 = vst.msk [vmem:[#allocation9 + $0x6] sm:$0x3] %vm301_vm3, %v1505_v24 }
0x19a2   :  { %1689 = vst.msk [vmem:[#allocation9 + $0x6] sm:$0x3] %vm484_vm4, %v1688_v21 }
0x19a4   :  { %v898_v25 = vpop.permute.xlu0 %897 }
0x19a5   :  { %900 = vst.msk [vmem:[#allocation9 + $0x2] sm:$0x3] %vm498_vm5, %v898_v25 }
0x19a8   :  { %v1700_v26 = vpop.permute.xlu0 %1699 }
0x19a9   :  { %1702 = vst.msk [vmem:[#allocation9 + $0x6] sm:$0x3] %vm498_vm5, %v1700_v26 }
0x19aa   :  { %2241 = shalt.err (!%p2238_p0)
}
0x19ab   :  { %s2242_s14 = scalar_lea.hbm %s2653_s5, 128 }
0x19ac   :  { %p2243_p1 = scmp.ne.s32.totalorder %s2653_s5, %s2242_s14  ;;  %p2246_p2 = scmp.lt.u32.totalorder %s2242_s14, %s2653_s5 }
0x19ae   :  { %p2248_p3 = pnand %p2246_p2, %p2243_p1 }
0x19b0   :  { %2251 = shalt.err (!%p2248_p3)
}
0x19b1   :  { %1717 = dma.vmem_to_hbm [thread:$0]  %s1715_s10, 128, %s2653_s5, [#allocation5]  }
0x1a05   :  { %v1705_v57 = vpop.permute.xlu1 %1704 }
0x1a06   :  { %1707 = vst.msk [vmem:[#allocation2] sm:$0x3] %vm66_vm0, %v1705_v57 }
0x1a07   :  { %2256 = dma.done.wait [#allocation5], 128  }
0x1a08   :  { %2257 = vsyncadd [#allocation5], 4294967168 }
0x1a09   :  { %1721 = vsyncpa [#allocation4], 1 }
0x1a0a   :  { %1722 = vsyncpa [#allocation7], 1 }
0x1a0b   :  { %1723 = vsyncpa [#allocation5], 1 }

</bundles_post_ra>
